<compile_context>
chip_gen: v7x
topology: tpu7x:2x2x1
jax: 0.10.0
libtpu: 0.0.40
codegen_flags: <defaults>
</compile_context>

<pallas_src>
import functools

import jax
import jax.numpy as jnp
from jax.experimental import pallas as pl
from jax.experimental.pallas import tpu as pltpu


def _neighbour_count_kernel(cand_ref, ctrT_ref, sqr_ref, bc_ref, br_ref,
                            out_ref, *, radii, max_points):
    # cand_ref: [TN, D+1]  candidate slab  [pos_c, ||pos_c||^2]   (streamed over k)
    # ctrT_ref: [D+1, TM]  centre slab     [-2*pos_r ; ones]       (constant over k)
    # sqr_ref:  [1, TM]    ||pos_r||^2 per centre
    # bc_ref:   [TN, 1]    candidate batch ids (padding = -1)
    # br_ref:   [1, TM]    centre batch ids
    # out_ref:  [R, TM]    counts, resident across the candidate axis
    k = pl.program_id(1)

    @pl.when(k == 0)
    def _():
        out_ref[...] = jnp.zeros_like(out_ref)

    # lhs[q, p] = -2 <cand_q, ctr_p> + ||cand_q||^2       (MXU, K = D+1)
    lhs = jnp.dot(cand_ref[...], ctrT_ref[...],
                  preferred_element_type=jnp.float32)            # [TN, TM]

    # Batch mask applied once; per-radius work is compare + sublane reduce.
    same = bc_ref[...] == br_ref[...]                            # [TN, TM]
    lhs = jnp.where(same, lhs, jnp.inf)

    sq_r = sqr_ref[...]                                          # [1, TM]
    for idx, r in enumerate(radii):
        # dist2 <= r^2  <=>  lhs <= r^2 - ||pos_r||^2  (per-centre threshold)
        thr = jnp.float32(r) * jnp.float32(r) - sq_r             # [1, TM]
        within = (lhs <= thr).astype(jnp.float32)                # [TN, TM]
        row = jnp.sum(within, axis=0, keepdims=True)             # [1, TM] lane-dense
        out_ref[pl.ds(idx, 1), :] = out_ref[pl.ds(idx, 1), :] + row

    @pl.when(k == pl.num_programs(1) - 1)
    def _():
        # torch_cluster.radius truncates at max_num_neighbors; the module then
        # divides by the same cap -> min(count, cap) / cap.
        for idx, cap in enumerate(max_points):
            capf = float(cap)
            cur = out_ref[pl.ds(idx, 1), :]
            out_ref[pl.ds(idx, 1), :] = (jnp.minimum(cur, jnp.float32(capf))
                                         * jnp.float32(1.0 / capf))


def _round_up(a, b):
    return ((a + b - 1) // b) * b


def add_neighbours_count(x, pos, batch, radii, max_points, *,
                         tile_m=256, tile_n=2048):
    """Pallas implementation of AddNeightboursCount.forward(x, pos, batch)."""
    N, D = pos.shape
    R = len(radii)

    pos_f = pos.astype(jnp.float32)
    # Global centering: distances are invariant, avoids f32 cancellation in the
    # expanded ||a||^2 + ||b||^2 - 2ab form for large coordinate offsets.
    pos_c = pos_f - jnp.mean(pos_f, axis=0, keepdims=True)
    batch_i = batch.astype(jnp.int32)

    # Centre (row) tile / padding.
    tm = min(int(tile_m), _round_up(N, 128))
    tm = max(128, _round_up(tm, 128))
    n_r = _round_up(N, tm)

    # Candidate tile / padding: keep the tile large, pad N up to a multiple of it.
    tn = min(int(tile_n), _round_up(N, 128))
    tn = max(128, _round_up(tn, 128))
    n_c = _round_up(N, tn)

    # Candidate-side slabs (padded rows get batch id -1 -> never match).
    pos_cand = jnp.pad(pos_c, ((0, n_c - N), (0, 0)))
    sq_cand = jnp.sum(pos_cand * pos_cand, axis=1, keepdims=True)          # [n_c, 1]
    cand_aug = jnp.concatenate([pos_cand, sq_cand], axis=1)                # [n_c, D+1]
    batch_cand = jnp.pad(batch_i, (0, n_c - N),
                         constant_values=-1).reshape(n_c, 1)

    # Centre-side slabs (padded centre columns are sliced off afterwards).
    pos_ctr = jnp.pad(pos_c, ((0, n_r - N), (0, 0)))
    ctr_aug = jnp.concatenate(
        [-2.0 * pos_ctr, jnp.ones((n_r, 1), jnp.float32)], axis=1)         # [n_r, D+1]
    ctr_augT = ctr_aug.T                                                   # [D+1, n_r]
    sq_ctr = jnp.sum(pos_ctr * pos_ctr, axis=1).reshape(1, n_r)            # [1, n_r]
    batch_ctr = jnp.pad(batch_i, (0, n_r - N),
                        constant_values=-1).reshape(1, n_r)

    kernel = functools.partial(
        _neighbour_count_kernel,
        radii=tuple(float(r) for r in radii),
        max_points=tuple(float(m) for m in max_points))

    counts_rt = pl.pallas_call(
        kernel,
        out_shape=jax.ShapeDtypeStruct((R, n_r), jnp.float32),
        grid_spec=pltpu.PrefetchScalarGridSpec(
            num_scalar_prefetch=0,
            grid=(n_r // tm, n_c // tn),
            in_specs=[
                pl.BlockSpec((tn, D + 1), lambda i, k: (k, 0)),   # candidate slab
                pl.BlockSpec((D + 1, tm), lambda i, k: (0, i)),   # centre slab (T)
                pl.BlockSpec((1, tm), lambda i, k: (0, i)),       # ||pos_r||^2
                pl.BlockSpec((tn, 1), lambda i, k: (k, 0)),       # candidate batch
                pl.BlockSpec((1, tm), lambda i, k: (0, i)),       # centre batch
            ],
            out_specs=pl.BlockSpec((R, tm), lambda i, k: (0, i)),
        ),
        compiler_params=pltpu.CompilerParams(
            dimension_semantics=("parallel", "arbitrary"),
            vmem_limit_bytes=48 * 1024 * 1024),
    )(cand_aug, ctr_augT, sq_ctr, batch_cand, batch_ctr)

    counts = counts_rt[:, :N].T                                            # [N, R]

    if x is None:
        feats = pos_f
    else:
        feats = jnp.concatenate([x.astype(jnp.float32), pos_f], axis=1)
    out_x = jnp.concatenate([feats, counts], axis=1)
    return out_x, pos, batch


def _reference_counts(pos, batch, radii, max_points):
    """Pure-JAX reference (exact coordinate-difference distances)."""
    p = pos.astype(jnp.float32)
    diff = p[:, None, :] - p[None, :, :]
    d2 = jnp.sum(diff * diff, axis=-1)
    same = batch[:, None] == batch[None, :]
    d2 = jnp.where(same, d2, jnp.inf)
    cols = []
    for r, mp in zip(radii, max_points):
        c = jnp.sum((d2 <= float(r) * float(r)).astype(jnp.float32), axis=1)
        cols.append(jnp.minimum(c, float(mp)) / float(mp))
    return jnp.stack(cols, axis=1)


if __name__ == "__main__":
    # Module "parameters" (constructor args) — deterministic, in-script.
    radii = (0.25, 0.5)
    max_points = (8, 32)

    # Small deterministic inputs: N=200 points (exercises padding), D=3 coords,
    # F=4 features, 2 batches.
    key = jax.random.PRNGKey(0)
    k_pos, k_x = jax.random.split(key)
    N, D, F = 200, 3, 4
    pos = jax.random.uniform(k_pos, (N, D), dtype=jnp.float32)
    x = jax.random.normal(k_x, (N, F), dtype=jnp.float32)
    batch = jnp.concatenate(
        [jnp.zeros((N // 2,), jnp.int32), jnp.ones((N - N // 2,), jnp.int32)])

    out_x, out_pos, out_batch = add_neighbours_count(
        x, pos, batch, radii, max_points)
    jax.block_until_ready((out_x, out_pos, out_batch))

    assert out_x.shape == (N, F + D + len(radii)), out_x.shape
    assert out_pos.shape == (N, D)
    assert out_batch.shape == (N,)

    # Sanity check against a pure-JAX reference (loose tol: one boundary flip
    # from f32 rounding changes a normalized count by at most 1/8).
    ref = _reference_counts(pos, batch, radii, max_points)
    err = float(jnp.max(jnp.abs(out_x[:, F + D:] - ref)))
    assert err <= 0.15, f"count mismatch, max abs err={err}"

    print("KERNEL_OK")
</pallas_src>

<mosaic_0001>
module attributes {stable_mosaic.version = 11 : i64} {
  func.func @_neighbour_count_kernel(%arg0: i32, %arg1: i32, %arg2: memref<256x4xf32, #tpu.memory_space<vmem>>, %arg3: memref<4x256xf32, #tpu.memory_space<vmem>>, %arg4: memref<1x256xf32, #tpu.memory_space<vmem>>, %arg5: memref<256x1xi32, #tpu.memory_space<vmem>>, %arg6: memref<1x256xi32, #tpu.memory_space<vmem>>, %arg7: memref<2x256xf32, #tpu.memory_space<vmem>>) attributes {dimension_semantics = [#tpu.dimension_semantics<parallel>, #tpu.dimension_semantics<arbitrary>], iteration_bounds = array<i64: 1, 1>, scalar_prefetch = 0 : i64, scratch_operands = 0 : i64, tpu.core_type = #tpu.core_type<tc>, window_params = [{transform_indices = @transform_0, window_bounds = array<i64: 256, 4>}, {transform_indices = @transform_1, window_bounds = array<i64: 4, 256>}, {transform_indices = @transform_2, window_bounds = array<i64: 1, 256>}, {transform_indices = @transform_3, window_bounds = array<i64: 256, 1>}, {transform_indices = @transform_4, window_bounds = array<i64: 1, 256>}, {transform_indices = @transform_5, window_bounds = array<i64: 2, 256>}]} {
    %c0_i32 = arith.constant 0 : i32
    %0 = arith.cmpi eq, %arg1, %c0_i32 : i32
    %1 = arith.extui %0 : i1 to i32
    %c0_i32_0 = arith.constant 0 : i32
    %2 = arith.cmpi ne, %1, %c0_i32_0 : i32
    scf.if %2 {
      %cst_26 = arith.constant 0.000000e+00 : f32
      %41 = vector.broadcast %cst_26 : f32 to vector<2x256xf32>
      %c0_27 = arith.constant 0 : index
      %c0_28 = arith.constant 0 : index
      %42 = vector.load %arg7[%c0_27, %c0_28] : memref<2x256xf32, #tpu.memory_space<vmem>>, vector<2x256xf32>
      tpu.vector_store %arg7[%c0_27, %c0_28], %41 {strides = array<i32>} : memref<2x256xf32, #tpu.memory_space<vmem>>, vector<2x256xf32>,
    } else {
    }
    %c0 = arith.constant 0 : index
    %c0_1 = arith.constant 0 : index
    %3 = vector.load %arg2[%c0, %c0_1] : memref<256x4xf32, #tpu.memory_space<vmem>>, vector<256x4xf32>
    %c0_2 = arith.constant 0 : index
    %c0_3 = arith.constant 0 : index
    %4 = vector.load %arg3[%c0_2, %c0_3] : memref<4x256xf32, #tpu.memory_space<vmem>>, vector<4x256xf32>
    %cst = arith.constant dense<0.000000e+00> : vector<256x256xf32>
    %5 = tpu.matmul %3, %4, %cst {dimension_numbers = #tpu.dot_dimension_numbers<[1], [0], [0], [1], [0, 0, 1, 1], [], []>} : vector<256x4xf32>, vector<4x256xf32>, vector<256x256xf32> -> vector<256x256xf32>
    %c0_4 = arith.constant 0 : index
    %c0_5 = arith.constant 0 : index
    %6 = vector.load %arg5[%c0_4, %c0_5] : memref<256x1xi32, #tpu.memory_space<vmem>>, vector<256x1xi32>
    %c0_6 = arith.constant 0 : index
    %c0_7 = arith.constant 0 : index
    %7 = vector.load %arg6[%c0_6, %c0_7] : memref<1x256xi32, #tpu.memory_space<vmem>>, vector<1x256xi32>
    %8 = vector.broadcast %6 : vector<256x1xi32> to vector<256x256xi32>
    %9 = vector.broadcast %7 : vector<1x256xi32> to vector<256x256xi32>
    %10 = arith.cmpi eq, %8, %9 : vector<256x256xi32>
    %cst_8 = arith.constant 0x7F800000 : f32
    %11 = vector.broadcast %cst_8 : f32 to vector<256x256xf32>
    %12 = arith.select %10, %5, %11 : vector<256x256xi1>, vector<256x256xf32>
    %c0_9 = arith.constant 0 : index
    %c0_10 = arith.constant 0 : index
    %13 = vector.load %arg4[%c0_9, %c0_10] : memref<1x256xf32, #tpu.memory_space<vmem>>, vector<1x256xf32>
    %cst_11 = arith.constant 2.500000e-01 : f32
    %cst_12 = arith.constant 2.500000e-01 : f32
    %14 = arith.mulf %cst_11, %cst_12 : f32
    %15 = vector.broadcast %14 : f32 to vector<1x256xf32>
    %16 = arith.subf %15, %13 : vector<1x256xf32>
    %17 = vector.broadcast %16 : vector<1x256xf32> to vector<256x256xf32>
    %18 = arith.cmpf ole, %12, %17 : vector<256x256xf32>
    %19 = arith.extui %18 : vector<256x256xi1> to vector<256x256xi32>
    %20 = arith.sitofp %19 : vector<256x256xi32> to vector<256x256xf32>
    %cst_13 = arith.constant dense<0.000000e+00> : vector<256xf32>
    %21 = vector.multi_reduction <add>, %20, %cst_13 [0] : vector<256x256xf32> to vector<256xf32>
    %22 = vector.shape_cast %21 : vector<256xf32> to vector<1x256xf32>
    %c0_14 = arith.constant 0 : index
    %c0_15 = arith.constant 0 : index
    %23 = vector.load %arg7[%c0_14, %c0_15] : memref<2x256xf32, #tpu.memory_space<vmem>>, vector<1x256xf32>
    %24 = arith.addf %23, %22 : vector<1x256xf32>
    %c0_16 = arith.constant 0 : index
    %c0_17 = arith.constant 0 : index
    %25 = vector.load %arg7[%c0_16, %c0_17] : memref<2x256xf32, #tpu.memory_space<vmem>>, vector<1x256xf32>
    tpu.vector_store %arg7[%c0_16, %c0_17], %24 {strides = array<i32>} : memref<2x256xf32, #tpu.memory_space<vmem>>, vector<1x256xf32>,
    %cst_18 = arith.constant 5.000000e-01 : f32
    %cst_19 = arith.constant 5.000000e-01 : f32
    %26 = arith.mulf %cst_18, %cst_19 : f32
    %27 = vector.broadcast %26 : f32 to vector<1x256xf32>
    %28 = arith.subf %27, %13 : vector<1x256xf32>
    %29 = vector.broadcast %28 : vector<1x256xf32> to vector<256x256xf32>
    %30 = arith.cmpf ole, %12, %29 : vector<256x256xf32>
    %31 = arith.extui %30 : vector<256x256xi1> to vector<256x256xi32>
    %32 = arith.sitofp %31 : vector<256x256xi32> to vector<256x256xf32>
    %cst_20 = arith.constant dense<0.000000e+00> : vector<256xf32>
    %33 = vector.multi_reduction <add>, %32, %cst_20 [0] : vector<256x256xf32> to vector<256xf32>
    %34 = vector.shape_cast %33 : vector<256xf32> to vector<1x256xf32>
    %c1 = arith.constant 1 : index
    %c0_21 = arith.constant 0 : index
    %35 = vector.load %arg7[%c1, %c0_21] : memref<2x256xf32, #tpu.memory_space<vmem>>, vector<1x256xf32>
    %36 = arith.addf %35, %34 : vector<1x256xf32>
    %c1_22 = arith.constant 1 : index
    %c0_23 = arith.constant 0 : index
    %37 = vector.load %arg7[%c1_22, %c0_23] : memref<2x256xf32, #tpu.memory_space<vmem>>, vector<1x256xf32>
    tpu.vector_store %arg7[%c1_22, %c0_23], %36 {strides = array<i32>} : memref<2x256xf32, #tpu.memory_space<vmem>>, vector<1x256xf32>,
    %c0_i32_24 = arith.constant 0 : i32
    %38 = arith.cmpi eq, %arg1, %c0_i32_24 : i32
    %39 = arith.extui %38 : i1 to i32
    %c0_i32_25 = arith.constant 0 : i32
    %40 = arith.cmpi ne, %39, %c0_i32_25 : i32
    scf.if %40 {
      %c0_26 = arith.constant 0 : index
      %c0_27 = arith.constant 0 : index
      %41 = vector.load %arg7[%c0_26, %c0_27] : memref<2x256xf32, #tpu.memory_space<vmem>>, vector<1x256xf32>
      %cst_28 = arith.constant 8.000000e+00 : f32
      %42 = vector.broadcast %cst_28 : f32 to vector<1x256xf32>
      %43 = arith.minimumf %41, %42 : vector<1x256xf32>
      %cst_29 = arith.constant 1.250000e-01 : f32
      %44 = vector.broadcast %cst_29 : f32 to vector<1x256xf32>
      %45 = arith.mulf %43, %44 : vector<1x256xf32>
      %c0_30 = arith.constant 0 : index
      %c0_31 = arith.constant 0 : index
      %46 = vector.load %arg7[%c0_30, %c0_31] : memref<2x256xf32, #tpu.memory_space<vmem>>, vector<1x256xf32>
      tpu.vector_store %arg7[%c0_30, %c0_31], %45 {strides = array<i32>} : memref<2x256xf32, #tpu.memory_space<vmem>>, vector<1x256xf32>,
      %c1_32 = arith.constant 1 : index
      %c0_33 = arith.constant 0 : index
      %47 = vector.load %arg7[%c1_32, %c0_33] : memref<2x256xf32, #tpu.memory_space<vmem>>, vector<1x256xf32>
      %cst_34 = arith.constant 3.200000e+01 : f32
      %48 = vector.broadcast %cst_34 : f32 to vector<1x256xf32>
      %49 = arith.minimumf %47, %48 : vector<1x256xf32>
      %cst_35 = arith.constant 3.125000e-02 : f32
      %50 = vector.broadcast %cst_35 : f32 to vector<1x256xf32>
      %51 = arith.mulf %49, %50 : vector<1x256xf32>
      %c1_36 = arith.constant 1 : index
      %c0_37 = arith.constant 0 : index
      %52 = vector.load %arg7[%c1_36, %c0_37] : memref<2x256xf32, #tpu.memory_space<vmem>>, vector<1x256xf32>
      tpu.vector_store %arg7[%c1_36, %c0_37], %51 {strides = array<i32>} : memref<2x256xf32, #tpu.memory_space<vmem>>, vector<1x256xf32>,
    } else {
    }
    return
  }
  func.func @transform_0(%arg0: i32, %arg1: i32) -> (i32, i32) {
    %c0_i32 = arith.constant 0 : i32
    %c0_i32_0 = arith.constant 0 : i32
    return %arg1, %c0_i32 : i32, i32
  }
  func.func @transform_1(%arg0: i32, %arg1: i32) -> (i32, i32) {
    %c0_i32 = arith.constant 0 : i32
    %c0_i32_0 = arith.constant 0 : i32
    return %c0_i32, %arg0 : i32, i32
  }
  func.func @transform_2(%arg0: i32, %arg1: i32) -> (i32, i32) {
    %c0_i32 = arith.constant 0 : i32
    %c0_i32_0 = arith.constant 0 : i32
    return %c0_i32, %arg0 : i32, i32
  }
  func.func @transform_3(%arg0: i32, %arg1: i32) -> (i32, i32) {
    %c0_i32 = arith.constant 0 : i32
    %c0_i32_0 = arith.constant 0 : i32
    return %arg1, %c0_i32 : i32, i32
  }
  func.func @transform_4(%arg0: i32, %arg1: i32) -> (i32, i32) {
    %c0_i32 = arith.constant 0 : i32
    %c0_i32_0 = arith.constant 0 : i32
    return %c0_i32, %arg0 : i32, i32
  }
  func.func @transform_5(%arg0: i32, %arg1: i32) -> (i32, i32) {
    %c0_i32 = arith.constant 0 : i32
    %c0_i32_0 = arith.constant 0 : i32
    return %c0_i32, %arg0 : i32, i32
  }
}

</mosaic_0001>

<bundles_post_ra>
// kernel: tpu_custom_call.1
= control target key start
LH: loop header
LB: loop body
LE: loop exit
PB: predicated region body
PF: predicated region fallthrough
CT: control target
= control target key end

     0   :  { %vm158_vm0 = vcmask 1043456   ;;  %v2732_v2 = vmov 0.0   ;;  %vm61_vm1 = vcmask 31744   ;;  %v1510_v5 = vmov 0   ;;  %s2724_s0 = inlined_call_operand.vmem [shape: f32[256,4], index: 0, kind: input, shape index: {}]   ;;  %s2725_s1 = inlined_call_operand.vmem [shape: f32[4,256], index: 1, kind: input, shape index: {}]   ;;  %s2726_s2 = inlined_call_operand.vmem [shape: f32[1,256], index: 2, kind: input, shape index: {}]   ;;  %s2727_s3 = inlined_call_operand.vmem [shape: s32[256,1], index: 3, kind: input, shape index: {}]   ;;  %s2728_s4 = inlined_call_operand.vmem [shape: s32[1,256], index: 4, kind: input, shape index: {}]   ;;  %s2729_s5 = inlined_call_operand.hbm [shape: f32[2,256], index: 5, kind: output, shape index: {}]  }
   0x1   :  { %v58_v0 = vld [vmem:[%s2725_s1] sm:$0xff]  ;;  %227 = vmatprep.mubr.f32.mxu0 %v2732_v2  ;;  %25 = vst [vmem:[#allocation2] sm:$0xf] %v2732_v2  ;;  %323 = vmatprep.mubr.f32.mxu1 %v2732_v2  ;;  %v27_v6 = vld [vmem:[%s2724_s0 + $0x8] sm:$0xff]  ;;  %v28_v9 = vld [vmem:[%s2724_s0 + $0x10] sm:$0xff] }
   0x2   :  { %v60_v1 = vcombine.high %v58_v0, %v58_v0  ;;  %v26_v3 = vld [vmem:[%s2724_s0] sm:$0xff]  ;;  %1482 = vset.pattern.permute.xlu0 %v1510_v5  ;;  %1483 = vset.pattern.permute.xlu1 %v1510_v5  ;;  %v43_v7 = vld [vmem:[%s2724_s0 + $0x88] sm:$0xff]  ;;  %v44_v10 = vld [vmem:[%s2724_s0 + $0x90] sm:$0xff] }
   0x3   :  { %v42_v4 = vld [vmem:[%s2724_s0 + $0x80] sm:$0xff]  ;;  %v422_v11 = vld [vmem:[%s2727_s3 + $0x10] sm:$0xff]  ;;  %v421_v12 = vld [vmem:[%s2727_s3 + $0x8] sm:$0xff] }
   0x4   :  { %1314 = vmatprep.subr.msk.mxu0 %vm158_vm0, %v60_v1  ;;  %1476 = vmatprep.subr.msk.mxu1 %vm158_vm0, %v60_v1  ;;  %v420_v8 = vld [vmem:[%s2727_s3] sm:$0xff]  ;;  %v423_v13 = vld [vmem:[%s2727_s3 + $0x18] sm:$0xff]  ;;  %v425_v17 = vld [vmem:[%s2727_s3 + $0x28] sm:$0xff] }
   0x5   :  { %1315 = vmatpush1.msk.msra.mxu0 %vm158_vm0, %v58_v0  ;;  %1477 = vmatpush1.msk.msra.mxu1 %vm158_vm0, %v58_v0  ;;  %v29_v14 = vld [vmem:[%s2724_s0 + $0x18] sm:$0xff]  ;;  %v424_v16 = vld [vmem:[%s2727_s3 + $0x20] sm:$0xff]  ;;  %v426_v20 = vld [vmem:[%s2727_s3 + $0x30] sm:$0xff] }
   0x6   :  { %1316 = vmatmul.mubr.msk.f32.vlgmr.msra.gmra.mrb[0].mxu0 %vm61_vm1, %v26_v3  ;;  %1332 = vmatmul.mubr.msk.f32.vlgmr.msra.gmra.mrb[0].mxu1 %vm61_vm1, %v42_v4  ;;  %v45_v15 = vld [vmem:[%s2724_s0 + $0x98] sm:$0xff]  ;;  %v30_v18 = vld [vmem:[%s2724_s0 + $0x20] sm:$0xff] }
   0x7   :  { %233 = vmatprep.mubr.f32.mxu0 %v2732_v2  ;;  %329 = vmatprep.mubr.f32.mxu1 %v2732_v2  ;;  %v46_v19 = vld [vmem:[%s2724_s0 + $0xa0] sm:$0xff]  ;;  %v427_v21 = vld [vmem:[%s2727_s3 + $0x38] sm:$0xff] }
   0x8   :  { %454 = vperm.xlu0 %1482, %v420_v8   ;;  %460 = vperm.xlu1 %1483, %v422_v11  }
   0xa   :  { %1317 = vmatmul.mubr.msk.f32.gmra.mrb[2].mxu0 %vm61_vm1, %v27_v6  ;;  %1333 = vmatmul.mubr.msk.f32.gmra.mrb[2].mxu1 %vm61_vm1, %v43_v7 }
   0xb   :  { %239 = vmatprep.mubr.f32.mxu0 %v2732_v2  ;;  %335 = vmatprep.mubr.f32.mxu1 %v2732_v2 }
   0xc   :  { %457 = vperm.xlu0 %1482, %v421_v12   ;;  %463 = vperm.xlu1 %1483, %v423_v13  }
   0xe   :  { %1318 = vmatmul.mubr.msk.f32.gmra.mrb[4].mxu0 %vm61_vm1, %v28_v9  ;;  %1334 = vmatmul.mubr.msk.f32.gmra.mrb[4].mxu1 %vm61_vm1, %v44_v10 }
   0xf   :  { %245 = vmatprep.mubr.f32.mxu0 %v2732_v2  ;;  %341 = vmatprep.mubr.f32.mxu1 %v2732_v2 }
  0x10   :  { %466 = vperm.xlu0 %1482, %v424_v16   ;;  %469 = vperm.xlu1 %1483, %v425_v17  }
  0x12   :  { %1319 = vmatmul.mubr.msk.f32.gmra.mrb[6].mxu0 %vm61_vm1, %v29_v14  ;;  %1335 = vmatmul.mubr.msk.f32.gmra.mrb[6].mxu1 %vm61_vm1, %v45_v15 }
  0x13   :  { %251 = vmatprep.mubr.f32.mxu0 %v2732_v2  ;;  %347 = vmatprep.mubr.f32.mxu1 %v2732_v2 }
  0x16   :  { %1320 = vmatmul.mubr.msk.f32.gmra.mrb[8].mxu0 %vm61_vm1, %v30_v18  ;;  %1336 = vmatmul.mubr.msk.f32.gmra.mrb[8].mxu1 %vm61_vm1, %v46_v19 }
  0x17   :  { %10 = vsyncpa [#allocation3], 0  ;;  %257 = vmatprep.mubr.f32.mxu0 %v2732_v2  ;;  %353 = vmatprep.mubr.f32.mxu1 %v2732_v2  ;;  %v31_v22 = vld [vmem:[%s2724_s0 + $0x28] sm:$0xff]  ;;  %v428_v24 = vld [vmem:[%s2727_s3 + $0x40] sm:$0xff]  ;;  %v2730_v9 = vlaneseq }
  0x18   :  { %v47_v23 = vld [vmem:[%s2724_s0 + $0xa8] sm:$0xff]  ;;  %472 = vperm.xlu0 %1482, %v426_v20   ;;  %475 = vperm.xlu1 %1483, %v427_v21   ;;  %v32_v26 = vld [vmem:[%s2724_s0 + $0x30] sm:$0xff]  ;;  %v431_v29 = vld [vmem:[%s2727_s3 + $0x58] sm:$0xff] }
  0x19   :  { %v429_v25 = vld [vmem:[%s2727_s3 + $0x48] sm:$0xff]  ;;  %v48_v27 = vld [vmem:[%s2724_s0 + $0xb0] sm:$0xff]  ;;  %v33_v30 = vld [vmem:[%s2724_s0 + $0x38] sm:$0xff]  ;;  %v1810_v11 = vshrl.u32 %v2730_v9, 7 }
  0x1a   :  { %1321 = vmatmul.mubr.msk.f32.gmra.mrb[10].mxu0 %vm61_vm1, %v31_v22  ;;  %1337 = vmatmul.mubr.msk.f32.gmra.mrb[10].mxu1 %vm61_vm1, %v47_v23  ;;  %v430_v28 = vld [vmem:[%s2727_s3 + $0x50] sm:$0xff]  ;;  %v49_v31 = vld [vmem:[%s2724_s0 + $0xb8] sm:$0xff]  ;;  %v432_v32 = vld [vmem:[%s2727_s3 + $0x60] sm:$0xff] }
  0x1b   :  { %263 = vmatprep.mubr.f32.mxu0 %v2732_v2  ;;  %359 = vmatprep.mubr.f32.mxu1 %v2732_v2  ;;  %v433_v33 = vld [vmem:[%s2727_s3 + $0x68] sm:$0xff]  ;;  %v34_v34 = vld [vmem:[%s2724_s0 + $0x40] sm:$0xff]  ;;  %v434_v36 = vld [vmem:[%s2727_s3 + $0x70] sm:$0xff]  ;;  %2734 = vst [vmem:[#allocation5_spill] sm:$0xff] %v1810_v11  ;;  %v551_v13 = vsub.s32 0, %v1810_v11  ;;  %v555_v17 = vsub.s32 1, %v1810_v11 }
  0x1c   :  { %478 = vperm.xlu0 %1482, %v428_v24   ;;  %481 = vperm.xlu1 %1483, %v429_v25   ;;  %v50_v35 = vld [vmem:[%s2724_s0 + $0xc0] sm:$0xff]  ;;  %v435_v37 = vld [vmem:[%s2727_s3 + $0x78] sm:$0xff]  ;;  %v35_v38 = vld [vmem:[%s2724_s0 + $0x48] sm:$0xff] }
  0x1d   :  { %v51_v39 = vld [vmem:[%s2724_s0 + $0xc8] sm:$0xff]  ;;  %v436_v40 = vld [vmem:[%s2727_s3 + $0x80] sm:$0xff]  ;;  %v36_v42 = vld [vmem:[%s2724_s0 + $0x50] sm:$0xff] }
  0x1e   :  { %1322 = vmatmul.mubr.msk.f32.gmra.mrb[12].mxu0 %vm61_vm1, %v32_v26  ;;  %1338 = vmatmul.mubr.msk.f32.gmra.mrb[12].mxu1 %vm61_vm1, %v48_v27  ;;  %v437_v41 = vld [vmem:[%s2727_s3 + $0x88] sm:$0xff]  ;;  %v52_v43 = vld [vmem:[%s2724_s0 + $0xd0] sm:$0xff]  ;;  %v439_v45 = vld [vmem:[%s2727_s3 + $0x98] sm:$0xff] }
  0x1f   :  { %269 = vmatprep.mubr.f32.mxu0 %v2732_v2  ;;  %365 = vmatprep.mubr.f32.mxu1 %v2732_v2  ;;  %v438_v44 = vld [vmem:[%s2727_s3 + $0x90] sm:$0xff]  ;;  %v37_v46 = vld [vmem:[%s2724_s0 + $0x58] sm:$0xff]  ;;  %v440_v48 = vld [vmem:[%s2727_s3 + $0xa0] sm:$0xff] }
  0x20   :  { %484 = vperm.xlu0 %1482, %v430_v28   ;;  %487 = vperm.xlu1 %1483, %v431_v29   ;;  %v53_v47 = vld [vmem:[%s2724_s0 + $0xd8] sm:$0xff]  ;;  %v441_v49 = vld [vmem:[%s2727_s3 + $0xa8] sm:$0xff]  ;;  %v38_v50 = vld [vmem:[%s2724_s0 + $0x60] sm:$0xff] }
  0x21   :  { %v54_v51 = vld [vmem:[%s2724_s0 + $0xe0] sm:$0xff]  ;;  %v442_v52 = vld [vmem:[%s2727_s3 + $0xb0] sm:$0xff]  ;;  %v443_v53 = vld [vmem:[%s2727_s3 + $0xb8] sm:$0xff] }
  0x22   :  { %1323 = vmatmul.mubr.msk.f32.gmra.mrb[14].mxu0 %vm61_vm1, %v33_v30  ;;  %1339 = vmatmul.mubr.msk.f32.gmra.mrb[14].mxu1 %vm61_vm1, %v49_v31  ;;  %v39_v54 = vld [vmem:[%s2724_s0 + $0x68] sm:$0xff]  ;;  %v444_v56 = vld [vmem:[%s2727_s3 + $0xc0] sm:$0xff]  ;;  %v40_v58 = vld [vmem:[%s2724_s0 + $0x70] sm:$0xff] }
  0x23   :  { %275 = vmatprep.mubr.f32.mxu0 %v2732_v2  ;;  %371 = vmatprep.mubr.f32.mxu1 %v2732_v2  ;;  %v55_v55 = vld [vmem:[%s2724_s0 + $0xe8] sm:$0xff]  ;;  %v56_v59 = vld [vmem:[%s2724_s0 + $0xf0] sm:$0xff]  ;;  %v447_v61 = vld [vmem:[%s2727_s3 + $0xd8] sm:$0xff] }
  0x24   :  { %490 = vperm.xlu0 %1482, %v432_v32   ;;  %493 = vperm.xlu1 %1483, %v433_v33   ;;  %v445_v57 = vld [vmem:[%s2727_s3 + $0xc8] sm:$0xff]  ;;  %v446_v60 = vld [vmem:[%s2727_s3 + $0xd0] sm:$0xff]  ;;  %v41_v62 = vld [vmem:[%s2724_s0 + $0x78] sm:$0xff] }
  0x25   :  { %v57_v63 = vld [vmem:[%s2724_s0 + $0xf8] sm:$0xff]  ;;  %v448_v0 = vld [vmem:[%s2727_s3 + $0xe0] sm:$0xff]  ;;  %v449_v1 = vld [vmem:[%s2727_s3 + $0xe8] sm:$0xff] }
  0x26   :  { %1324 = vmatmul.mubr.msk.f32.gmra.mrb[16].mxu0 %vm61_vm1, %v34_v34  ;;  %1340 = vmatmul.mubr.msk.f32.gmra.mrb[16].mxu1 %vm61_vm1, %v50_v35  ;;  %v450_v3 = vld [vmem:[%s2727_s3 + $0xf0] sm:$0xff]  ;;  %v451_v4 = vld [vmem:[%s2727_s3 + $0xf8] sm:$0xff]  ;;  %v452_v15 = vld [vmem:[%s2728_s4] sm:$0x3] }
  0x27   :  { %281 = vmatprep.mubr.f32.mxu0 %v2732_v2  ;;  %377 = vmatprep.mubr.f32.mxu1 %v2732_v2  ;;  %v685_v16 = vld [vmem:[%s2726_s2] sm:$0x3]  ;;  %v1826_v19 = vrot.slane %v452_v15, %v551_v13  ;;  %v1828_v22 = vrot.slane %v452_v15, %v555_v17  ;;  %s1512_s2 = smov [#allocation2]  }
  0x28   :  { %496 = vperm.xlu0 %1482, %v434_v36   ;;  %499 = vperm.xlu1 %1483, %v435_v37   ;;  %v686_v20 = vsub.f32 0.0625, %v685_v16  ;;  %v989_v21 = vsub.f32 0.25, %v685_v16  ;;  %s1306_s4 = sshll.u32 %s1512_s2, 4  ;;  %s1307_s4 = int_to_ptr.vmem [resolvable:$true] %s1306_s4 }
  0x29   :  { %s1485_s20 = scalar_lea.vmem %s1307_s4, 64  ;;  %p1490_p1 = scmp.lt.s32.totalorder %s1307_s4, %s1307_s4 }
  0x2a   :  { %1325 = vmatmul.mubr.msk.f32.gmra.mrb[18].mxu0 %vm61_vm1, %v35_v38  ;;  %1341 = vmatmul.mubr.msk.f32.gmra.mrb[18].mxu1 %vm61_vm1, %v51_v39  ;;  %v1833_v24 = vrot.slane %v686_v20, %v551_v13  ;;  %v1835_v25 = vrot.slane %v989_v21, %v551_v13  ;;  %v1840_v27 = vrot.slane %v686_v20, %v555_v17  ;;  %p1486_p0 = scmp.ne.s32.totalorder %s1307_s4, %s1485_s20  ;;  %p1491_p2 = scmp.lt.s32.totalorder %s1485_s20, %s1485_s20 }
  0x2b   :  { %287 = vmatprep.mubr.f32.mxu0 %v2732_v2  ;;  %383 = vmatprep.mubr.f32.mxu1 %v2732_v2  ;;  %v1842_v28 = vrot.slane %v989_v21, %v555_v17 }
  0x2c   :  { %502 = vperm.xlu0 %1482, %v436_v40   ;;  %505 = vperm.xlu1 %1483, %v437_v41   ;;  %p1492_p3 = por %p1491_p2, %p1490_p1 }
  0x2e   :  { %1326 = vmatmul.mubr.msk.f32.gmra.mrb[20].mxu0 %vm61_vm1, %v36_v42  ;;  %1342 = vmatmul.mubr.msk.f32.gmra.mrb[20].mxu1 %vm61_vm1, %v52_v43  ;;  %p1493_p4 = pnand %p1492_p3, %p1486_p0 }
  0x2f   :  { %293 = vmatprep.mubr.f32.mxu0 %v2732_v2  ;;  %389 = vmatprep.mubr.f32.mxu1 %v2732_v2 }
  0x30   :  { %508 = vperm.xlu0 %1482, %v438_v44   ;;  %511 = vperm.xlu1 %1483, %v439_v45  }
  0x32   :  { %1327 = vmatmul.mubr.msk.f32.gmra.mrb[22].mxu0 %vm61_vm1, %v37_v46  ;;  %1343 = vmatmul.mubr.msk.f32.gmra.mrb[22].mxu1 %vm61_vm1, %v53_v47 }
  0x33   :  { %299 = vmatprep.mubr.f32.mxu0 %v2732_v2  ;;  %395 = vmatprep.mubr.f32.mxu1 %v2732_v2 }
  0x34   :  { %514 = vperm.xlu0 %1482, %v440_v48   ;;  %517 = vperm.xlu1 %1483, %v441_v49  }
  0x36   :  { %1328 = vmatmul.mubr.msk.f32.gmra.mrb[24].mxu0 %vm61_vm1, %v38_v50  ;;  %1344 = vmatmul.mubr.msk.f32.gmra.mrb[24].mxu1 %vm61_vm1, %v54_v51 }
  0x37   :  { %305 = vmatprep.mubr.f32.mxu0 %v2732_v2  ;;  %401 = vmatprep.mubr.f32.mxu1 %v2732_v2 }
  0x38   :  { %520 = vperm.xlu0 %1482, %v442_v52   ;;  %523 = vperm.xlu1 %1483, %v443_v53  }
  0x3a   :  { %1329 = vmatmul.mubr.msk.f32.gmra.mrb[26].mxu0 %vm61_vm1, %v39_v54  ;;  %1345 = vmatmul.mubr.msk.f32.gmra.mrb[26].mxu1 %vm61_vm1, %v55_v55 }
  0x3b   :  { %311 = vmatprep.mubr.f32.mxu0 %v2732_v2  ;;  %407 = vmatprep.mubr.f32.mxu1 %v2732_v2 }
  0x3c   :  { %526 = vperm.xlu0 %1482, %v444_v56   ;;  %529 = vperm.xlu1 %1483, %v445_v57  }
  0x3e   :  { %1330 = vmatmul.mubr.msk.f32.gmra.mrb[28].mxu0 %vm61_vm1, %v40_v58  ;;  %1346 = vmatmul.mubr.msk.f32.gmra.mrb[28].mxu1 %vm61_vm1, %v56_v59 }
  0x3f   :  { %317 = vmatprep.mubr.f32.mxu0 %v2732_v2  ;;  %413 = vmatprep.mubr.f32.mxu1 %v2732_v2 }
  0x40   :  { %532 = vperm.xlu0 %1482, %v446_v60   ;;  %535 = vperm.xlu1 %1483, %v447_v61  }
  0x42   :  { %1331 = vmatmul.mubr.msk.f32.gmra.mrb[30].mxu0 %vm61_vm1, %v41_v62  ;;  %1347 = vmatmul.mubr.msk.f32.gmra.mrb[30].mxu1 %vm61_vm1, %v57_v63 }
  0x44   :  { %538 = vperm.xlu0 %1482, %v448_v0   ;;  %541 = vperm.xlu1 %1483, %v449_v1  }
  0x48   :  { %544 = vperm.xlu0 %1482, %v450_v3   ;;  %547 = vperm.xlu1 %1483, %v451_v4  }
  0x87   :  { %v455_v5 = vpop.permute.xlu0 %454  ;;  %v1803_v6 = vpop.permute.xlu1 %460 }
  0x88   :  { %vm557_vm2 = vcmp.eq.s32.totalorder %v455_v5, %v1826_v19  ;;  %vm558_vm3 = vcmp.eq.s32.totalorder %v455_v5, %v1828_v22  ;;  %vm561_vm10 = vcmp.eq.s32.totalorder %v1803_v6, %v1826_v19  ;;  %vm562_vm11 = vcmp.eq.s32.totalorder %v1803_v6, %v1828_v22 }
  0x8b   :  { %v458_v7 = vpop.permute.xlu0 %457  ;;  %v1805_v8 = vpop.permute.xlu1 %463 }
  0x8c   :  { %vm559_vm6 = vcmp.eq.s32.totalorder %v458_v7, %v1826_v19  ;;  %vm560_vm9 = vcmp.eq.s32.totalorder %v458_v7, %v1828_v22  ;;  %vm563_vm0 = vcmp.eq.s32.totalorder %v1805_v8, %v1826_v19 }
  0x8f   :  { %v1807_v10 = vpop.permute.xlu0 %466  ;;  %v1812_v12 = vpop.permute.xlu1 %469 }
  0x97   :  { %v1815_v14 = vpop.permute.xlu0 %472  ;;  %v1824_v18 = vpop.permute.xlu1 %475 }
  0x9b   :  { %v1830_v23 = vpop.permute.xlu0 %478  ;;  %v1837_v26 = vpop.permute.xlu1 %481 }
  0x9f   :  { %v1851_v35 = vpop.permute.xlu0 %484  ;;  %v1870_v46 = vpop.permute.xlu1 %487 }
  0xa3   :  { %v1894_v61 = vpop.permute.xlu0 %490  ;;  %v1918_v21 = vpop.permute.xlu1 %493 }
  0xd9   :  { %v229_v29 = vpop.f32.mrb[0].mxu0  ;;  %v1844_v30 = vpop.f32.mrb[0].mxu1 }
  0xda   :  { %v621_v31 = vsel %vm557_vm2, %v229_v29, inf  ;;  %v231_v32 = vpop.f32.mrb[1].mxu0  ;;  %v1846_v33 = vpop.f32.mrb[1].mxu1 }
  0xdb   :  { %vm698_vm4 = vcmp.le.f32.partialorder %v621_v31, %v1833_v24  ;;  %vm1001_vm5 = vcmp.le.f32.partialorder %v621_v31, %v1835_v25  ;;  %v622_v34 = vsel %vm558_vm3, %v231_v32, inf  ;;  %vm564_vm3 = vcmp.eq.s32.totalorder %v1805_v8, %v1828_v22 }
  0xdc   :  { %vm699_vm7 = vcmp.le.f32.partialorder %v622_v34, %v1840_v27  ;;  %vm1002_vm8 = vcmp.le.f32.partialorder %v622_v34, %v1842_v28  ;;  %v1348_v38 = vsel %vm698_vm4, 1.0, %v2732_v2  ;;  %v1412_v39 = vsel %vm1001_vm5, 1.0, %v2732_v2 }
  0xdd   :  { %v235_v36 = vpop.f32.mrb[2].mxu0  ;;  %v1860_v37 = vpop.f32.mrb[2].mxu1  ;;  %v1349_v40 = vsel %vm699_vm7, 1.0, %v2732_v2  ;;  %v1413_v44 = vsel %vm1002_vm8, 1.0, %v2732_v2 }
  0xde   :  { %v623_v41 = vsel %vm559_vm6, %v235_v36, inf  ;;  %v237_v42 = vpop.f32.mrb[3].mxu0  ;;  %v1865_v43 = vpop.f32.mrb[3].mxu1  ;;  %vm565_vm6 = vcmp.eq.s32.totalorder %v1807_v10, %v1826_v19 }
  0xdf   :  { %vm700_vm12 = vcmp.le.f32.partialorder %v623_v41, %v1833_v24  ;;  %vm1003_vm13 = vcmp.le.f32.partialorder %v623_v41, %v1835_v25  ;;  %v624_v45 = vsel %vm560_vm9, %v237_v42, inf  ;;  %vm566_vm9 = vcmp.eq.s32.totalorder %v1807_v10, %v1828_v22 }
  0xe0   :  { %v1350_v47 = vsel %vm700_vm12, 1.0, %v2732_v2  ;;  %v1414_v48 = vsel %vm1003_vm13, 1.0, %v2732_v2  ;;  %vm701_vm14 = vcmp.le.f32.partialorder %v624_v45, %v1840_v27  ;;  %vm1004_vm15 = vcmp.le.f32.partialorder %v624_v45, %v1842_v28 }
  0xe1   :  { %v890_v49 = vadd.f32 %v1350_v47, %v1348_v38  ;;  %v1193_v50 = vadd.f32 %v1414_v48, %v1412_v39  ;;  %v1351_v51 = vsel %vm701_vm14, 1.0, %v2732_v2  ;;  %v1415_v52 = vsel %vm1004_vm15, 1.0, %v2732_v2  ;;  %v241_v53 = vpop.f32.mrb[4].mxu0  ;;  %v1878_v54 = vpop.f32.mrb[4].mxu1 }
  0xe2   :  { %v927_v55 = vadd.f32 %v1351_v51, %v1349_v40  ;;  %v1230_v56 = vadd.f32 %v1415_v52, %v1413_v44  ;;  %v625_v57 = vsel %vm561_vm10, %v241_v53, inf  ;;  %v243_v58 = vpop.f32.mrb[5].mxu0  ;;  %v1885_v59 = vpop.f32.mrb[5].mxu1  ;;  %vm567_vm14 = vcmp.eq.s32.totalorder %v1812_v12, %v1826_v19 }
  0xe3   :  { %vm702_vm1 = vcmp.le.f32.partialorder %v625_v57, %v1833_v24  ;;  %vm1005_vm2 = vcmp.le.f32.partialorder %v625_v57, %v1835_v25  ;;  %v626_v60 = vsel %vm562_vm11, %v243_v58, inf  ;;  %v1940_v48 = vpop.permute.xlu0 %496 }
  0xe4   :  { %v1352_v62 = vsel %vm702_vm1, 1.0, %v2732_v2  ;;  %v1416_v63 = vsel %vm1005_vm2, 1.0, %v2732_v2  ;;  %vm703_vm4 = vcmp.le.f32.partialorder %v626_v60, %v1840_v27  ;;  %vm1006_vm5 = vcmp.le.f32.partialorder %v626_v60, %v1842_v28 }
  0xe5   :  { %v891_v0 = vadd.f32 %v1352_v62, %v890_v49  ;;  %v1194_v1 = vadd.f32 %v1416_v63, %v1193_v50  ;;  %v1353_v3 = vsel %vm703_vm4, 1.0, %v2732_v2  ;;  %v1417_v4 = vsel %vm1006_vm5, 1.0, %v2732_v2  ;;  %v247_v5 = vpop.f32.mrb[6].mxu0  ;;  %v1902_v6 = vpop.f32.mrb[6].mxu1 }
  0xe6   :  { %v928_v7 = vadd.f32 %v1353_v3, %v927_v55  ;;  %v1231_v13 = vadd.f32 %v1417_v4, %v1230_v56  ;;  %v627_v15 = vsel %vm563_vm0, %v247_v5, inf  ;;  %v249_v16 = vpop.f32.mrb[7].mxu0  ;;  %v1909_v17 = vpop.f32.mrb[7].mxu1 }
  0xe7   :  { %vm704_vm7 = vcmp.le.f32.partialorder %v627_v15, %v1833_v24  ;;  %vm1007_vm8 = vcmp.le.f32.partialorder %v627_v15, %v1835_v25  ;;  %v628_v20 = vsel %vm564_vm3, %v249_v16, inf  ;;  %vm568_vm3 = vcmp.eq.s32.totalorder %v1812_v12, %v1828_v22 }
  0xe8   :  { %v1354_v29 = vsel %vm704_vm7, 1.0, %v2732_v2  ;;  %v1418_v31 = vsel %vm1007_vm8, 1.0, %v2732_v2  ;;  %vm705_vm10 = vcmp.le.f32.partialorder %v628_v20, %v1840_v27  ;;  %vm1008_vm11 = vcmp.le.f32.partialorder %v628_v20, %v1842_v28 }
  0xe9   :  { %v892_v32 = vadd.f32 %v1354_v29, %v891_v0  ;;  %v1195_v34 = vadd.f32 %v1418_v31, %v1194_v1  ;;  %v1355_v36 = vsel %vm705_vm10, 1.0, %v2732_v2  ;;  %v1419_v8 = vsel %vm1008_vm11, 1.0, %v2732_v2  ;;  %v253_v38 = vpop.f32.mrb[8].mxu0  ;;  %v1926_v39 = vpop.f32.mrb[8].mxu1 }
  0xea   :  { %v929_v40 = vadd.f32 %v1355_v36, %v928_v7  ;;  %v1232_v41 = vadd.f32 %v1419_v8, %v1231_v13  ;;  %v629_v42 = vsel %vm565_vm6, %v253_v38, inf  ;;  %v255_v44 = vpop.f32.mrb[9].mxu0  ;;  %v1931_v45 = vpop.f32.mrb[9].mxu1  ;;  %vm569_vm6 = vcmp.eq.s32.totalorder %v1815_v14, %v1826_v19 }
  0xeb   :  { %vm706_vm12 = vcmp.le.f32.partialorder %v629_v42, %v1833_v24  ;;  %vm1009_vm13 = vcmp.le.f32.partialorder %v629_v42, %v1835_v25  ;;  %v630_v47 = vsel %vm566_vm9, %v255_v44, inf  ;;  %v1955_v0 = vpop.permute.xlu1 %499  ;;  %v503_v29 = vpop.permute.xlu0 %502  ;;  %vm570_vm7 = vcmp.eq.s32.totalorder %v1815_v14, %v1828_v22 }
  0xec   :  { %v1356_v49 = vsel %vm706_vm12, 1.0, %v2732_v2  ;;  %v1420_v50 = vsel %vm1009_vm13, 1.0, %v2732_v2  ;;  %vm707_vm15 = vcmp.le.f32.partialorder %v630_v47, %v1840_v27  ;;  %vm1010_vm0 = vcmp.le.f32.partialorder %v630_v47, %v1842_v28 }
  0xed   :  { %v893_v51 = vadd.f32 %v1356_v49, %v892_v32  ;;  %v1196_v52 = vadd.f32 %v1420_v50, %v1195_v34  ;;  %v1357_v53 = vsel %vm707_vm15, 1.0, %v2732_v2  ;;  %v1421_v10 = vsel %vm1010_vm0, 1.0, %v2732_v2  ;;  %v259_v55 = vpop.f32.mrb[10].mxu0  ;;  %v1948_v56 = vpop.f32.mrb[10].mxu1 }
  0xee   :  { %v930_v57 = vadd.f32 %v1357_v53, %v929_v40  ;;  %v1233_v58 = vadd.f32 %v1421_v10, %v1232_v41  ;;  %v261_v60 = vpop.f32.mrb[11].mxu0  ;;  %v1950_v62 = vpop.f32.mrb[11].mxu1  ;;  %v631_v63 = vsel %vm567_vm14, %v259_v55, inf  ;;  %vm589_vm10 = vcmp.eq.s32.totalorder %v503_v29, %v1826_v19 }
  0xef   :  { %vm708_vm1 = vcmp.le.f32.partialorder %v631_v63, %v1833_v24  ;;  %vm1011_vm2 = vcmp.le.f32.partialorder %v631_v63, %v1835_v25  ;;  %v632_v20 = vsel %vm568_vm3, %v261_v60, inf  ;;  %v506_v41 = vpop.permute.xlu1 %505  ;;  %v1992_v55 = vpop.permute.xlu0 %508  ;;  %vm590_vm11 = vcmp.eq.s32.totalorder %v503_v29, %v1828_v22 }
  0xf0   :  { %v1358_v1 = vsel %vm708_vm1, 1.0, %v2732_v2  ;;  %v1422_v3 = vsel %vm1011_vm2, 1.0, %v2732_v2  ;;  %vm709_vm4 = vcmp.le.f32.partialorder %v632_v20, %v1840_v27  ;;  %vm1012_vm5 = vcmp.le.f32.partialorder %v632_v20, %v1842_v28 }
  0xf1   :  { %v265_v4 = vpop.f32.mrb[12].mxu0  ;;  %v1963_v5 = vpop.f32.mrb[12].mxu1  ;;  %v894_v7 = vadd.f32 %v1358_v1, %v893_v51  ;;  %v1197_v13 = vadd.f32 %v1422_v3, %v1196_v52  ;;  %v1359_v12 = vsel %vm709_vm4, 1.0, %v2732_v2  ;;  %v1423_v31 = vsel %vm1012_vm5, 1.0, %v2732_v2 }
  0xf2   :  { %v267_v15 = vpop.f32.mrb[13].mxu0  ;;  %v1965_v16 = vpop.f32.mrb[13].mxu1  ;;  %v931_v36 = vadd.f32 %v1359_v12, %v930_v57  ;;  %v1234_v8 = vadd.f32 %v1423_v31, %v1233_v58  ;;  %v633_v42 = vsel %vm569_vm6, %v265_v4, inf  ;;  %vm571_vm14 = vcmp.eq.s32.totalorder %v1824_v18, %v1826_v19 }
  0xf3   :  { %vm710_vm8 = vcmp.le.f32.partialorder %v633_v42, %v1833_v24  ;;  %vm1013_vm9 = vcmp.le.f32.partialorder %v633_v42, %v1835_v25  ;;  %v634_v10 = vsel %vm570_vm7, %v267_v15, inf  ;;  %v653_v1 = vsel %vm589_vm10, %v1844_v30, inf  ;;  %v2012_v15 = vpop.permute.xlu1 %511 }
  0xf4   :  { %v1360_v49 = vsel %vm710_vm8, 1.0, %v2732_v2  ;;  %v1424_v50 = vsel %vm1013_vm9, 1.0, %v2732_v2  ;;  %vm711_vm12 = vcmp.le.f32.partialorder %v634_v10, %v1840_v27  ;;  %vm1014_vm13 = vcmp.le.f32.partialorder %v634_v10, %v1842_v28 }
  0xf5   :  { %v271_v32 = vpop.f32.mrb[14].mxu0  ;;  %v1973_v34 = vpop.f32.mrb[14].mxu1  ;;  %v895_v53 = vadd.f32 %v1360_v49, %v894_v7  ;;  %v1198_v14 = vadd.f32 %v1424_v50, %v1197_v13  ;;  %v1361_v57 = vsel %vm711_vm12, 1.0, %v2732_v2  ;;  %v1425_v58 = vsel %vm1014_vm13, 1.0, %v2732_v2 }
  0xf6   :  { %v273_v38 = vpop.f32.mrb[15].mxu0  ;;  %v1975_v40 = vpop.f32.mrb[15].mxu1  ;;  %v932_v3 = vadd.f32 %v1361_v57, %v931_v36  ;;  %v1235_v4 = vadd.f32 %v1425_v58, %v1234_v8  ;;  %vm572_vm15 = vcmp.eq.s32.totalorder %v1824_v18, %v1828_v22  ;;  %v654_v20 = vsel %vm590_vm11, %v1846_v33, inf }
  0xf7   :  { %vm591_vm0 = vcmp.eq.s32.totalorder %v506_v41, %v1826_v19  ;;  %vm573_vm1 = vcmp.eq.s32.totalorder %v1830_v23, %v1826_v19  ;;  %vm592_vm2 = vcmp.eq.s32.totalorder %v506_v41, %v1828_v22  ;;  %vm593_vm3 = vcmp.eq.s32.totalorder %v1992_v55, %v1826_v19 }
  0xf8   :  { %vm594_vm4 = vcmp.eq.s32.totalorder %v1992_v55, %v1828_v22  ;;  %vm595_vm5 = vcmp.eq.s32.totalorder %v2012_v15, %v1826_v19  ;;  %vm730_vm6 = vcmp.le.f32.partialorder %v653_v1, %v1833_v24  ;;  %vm1033_vm7 = vcmp.le.f32.partialorder %v653_v1, %v1835_v25 }
  0xf9   :  { %v1981_v44 = vpop.f32.mrb[16].mxu0  ;;  %v1983_v47 = vpop.f32.mrb[16].mxu1  ;;  %v635_v30 = vsel %vm571_vm14, %v271_v32, inf  ;;  %v636_v33 = vsel %vm572_vm15, %v273_v38, inf  ;;  %vm731_vm8 = vcmp.le.f32.partialorder %v654_v20, %v1840_v27  ;;  %v655_v31 = vsel %vm591_vm0, %v1860_v37, inf }
  0xfa   :  { %v1987_v51 = vpop.f32.mrb[17].mxu0  ;;  %v1989_v52 = vpop.f32.mrb[17].mxu1  ;;  %vm712_vm9 = vcmp.le.f32.partialorder %v635_v30, %v1833_v24  ;;  %vm1015_vm10 = vcmp.le.f32.partialorder %v635_v30, %v1835_v25  ;;  %vm1034_vm11 = vcmp.le.f32.partialorder %v654_v20, %v1842_v28  ;;  %v656_v18 = vsel %vm592_vm2, %v1865_v43, inf }
  0xfb   :  { %v1362_v32 = vsel %vm712_vm9, 1.0, %v2732_v2  ;;  %v1426_v38 = vsel %vm1015_vm10, 1.0, %v2732_v2  ;;  %vm574_vm12 = vcmp.eq.s32.totalorder %v1830_v23, %v1828_v22  ;;  %v2050_v37 = vpop.permute.xlu0 %514  ;;  %vm713_vm13 = vcmp.le.f32.partialorder %v636_v33, %v1840_v27 }
  0xfc   :  { %v896_v42 = vadd.f32 %v1362_v32, %v895_v53  ;;  %v1199_v49 = vadd.f32 %v1426_v38, %v1198_v14  ;;  %vm1016_vm14 = vcmp.le.f32.partialorder %v636_v33, %v1842_v28  ;;  %vm732_vm15 = vcmp.le.f32.partialorder %v655_v31, %v1833_v24 }
  0xfd   :  { %v2001_v60 = vpop.f32.mrb[18].mxu0  ;;  %v2003_v63 = vpop.f32.mrb[18].mxu1  ;;  %vm1035_vm0 = vcmp.le.f32.partialorder %v655_v31, %v1835_v25  ;;  %v1363_v43 = vsel %vm713_vm13, 1.0, %v2732_v2  ;;  %v1427_v41 = vsel %vm1016_vm14, 1.0, %v2732_v2  ;;  %vm733_vm2 = vcmp.le.f32.partialorder %v656_v18, %v1840_v27 }
  0xfe   :  { %v2008_v7 = vpop.f32.mrb[19].mxu0  ;;  %v2010_v13 = vpop.f32.mrb[19].mxu1  ;;  %v657_v53 = vsel %vm593_vm3, %v1878_v54, inf  ;;  %v933_v14 = vadd.f32 %v1363_v43, %v932_v3  ;;  %v1236_v57 = vadd.f32 %v1427_v41, %v1235_v4  ;;  %vm575_vm9 = vcmp.eq.s32.totalorder %v1837_v26, %v1826_v19 }
  0xff   :  { %vm1036_vm10 = vcmp.le.f32.partialorder %v656_v18, %v1842_v28  ;;  %vm596_vm13 = vcmp.eq.s32.totalorder %v2012_v15, %v1828_v22  ;;  %vm597_vm14 = vcmp.eq.s32.totalorder %v2050_v37, %v1826_v19  ;;  %v637_v54 = vsel %vm573_vm1, %v1981_v44, inf }
 0x100   :  { %v2085_v3 = vsel %vm730_vm6, 1.0, %v2732_v2  ;;  %v2090_v4 = vsel %vm1033_vm7, 1.0, %v2732_v2  ;;  %v2095_v33 = vsel %vm731_vm8, 1.0, %v2732_v2  ;;  %v2100_v32 = vsel %vm1034_vm11, 1.0, %v2732_v2 }
 0x101   :  { %v2030_v29 = vpop.f32.mrb[20].mxu0  ;;  %v2032_v12 = vpop.f32.mrb[20].mxu1  ;;  %v2105_v44 = vsel %vm732_vm15, 1.0, %v2732_v2  ;;  %v2110_v1 = vsel %vm1035_vm0, 1.0, %v2732_v2  ;;  %v2115_v38 = vsel %vm733_vm2, 1.0, %v2732_v2  ;;  %vm734_vm1 = vcmp.le.f32.partialorder %v657_v53, %v1833_v24 }
 0x102   :  { %v2038_v36 = vpop.f32.mrb[21].mxu0  ;;  %v2040_v8 = vpop.f32.mrb[21].mxu1  ;;  %2736 = vst [vmem:[#allocation7_spill] sm:$0xff] %v2115_v38  ;;  %vm598_vm3 = vcmp.eq.s32.totalorder %v2050_v37, %v1828_v22  ;;  %vm576_vm6 = vcmp.eq.s32.totalorder %v1837_v26, %v1828_v22  ;;  %v2129_v31 = vsel %vm1036_vm10, 1.0, %v2732_v2  ;;  %v658_v41 = vsel %vm594_vm4, %v1885_v59, inf }
 0x103   :  { %2738 = vst [vmem:[#allocation9_spill] sm:$0xff] %v2129_v31  ;;  %vm714_vm7 = vcmp.le.f32.partialorder %v637_v54, %v1833_v24  ;;  %vm1017_vm8 = vcmp.le.f32.partialorder %v637_v54, %v1835_v25  ;;  %vm1037_vm11 = vcmp.le.f32.partialorder %v657_v53, %v1835_v25  ;;  %v659_v18 = vsel %vm595_vm5, %v1902_v6, inf  ;;  %v2148_v59 = vpop.permute.xlu1 %517 }
 0x104   :  { %v1428_v55 = vsel %vm1017_vm8, 1.0, %v2732_v2  ;;  %v2153_v54 = vsel %vm734_vm1, 1.0, %v2732_v2  ;;  %v638_v31 = vsel %vm574_vm12, %v1987_v51, inf  ;;  %vm577_vm4 = vcmp.eq.s32.totalorder %v1851_v35, %v1826_v19 }
 0x105   :  { %v2058_v50 = vpop.f32.mrb[22].mxu0  ;;  %v2060_v10 = vpop.f32.mrb[22].mxu1  ;;  %vm735_vm5 = vcmp.le.f32.partialorder %v658_v41, %v1840_v27  ;;  %vm1038_vm15 = vcmp.le.f32.partialorder %v658_v41, %v1842_v28  ;;  %vm715_vm0 = vcmp.le.f32.partialorder %v638_v31, %v1840_v27  ;;  %vm1018_vm2 = vcmp.le.f32.partialorder %v638_v31, %v1842_v28 }
 0x106   :  { %v2069_v58 = vpop.f32.mrb[23].mxu0  ;;  %v2071_v30 = vpop.f32.mrb[23].mxu1  ;;  %v2172_v23 = vsel %vm1037_vm11, 1.0, %v2732_v2  ;;  %vm736_vm12 = vcmp.le.f32.partialorder %v659_v18, %v1833_v24  ;;  %vm599_vm10 = vcmp.eq.s32.totalorder %v2148_v59, %v1826_v19  ;;  %v1365_v51 = vsel %vm715_vm0, 1.0, %v2732_v2 }
 0x107   :  { %2735 = vst [vmem:[#allocation6_spill] sm:$0xff] %v2071_v30  ;;  %2741 = vst [vmem:[#allocation12_spill] sm:$0xff] %v2172_v23  ;;  %v660_v53 = vsel %vm596_vm13, %v1909_v17, inf  ;;  %v639_v38 = vsel %vm575_vm9, %v2001_v60, inf  ;;  %vm578_vm1 = vcmp.eq.s32.totalorder %v1851_v35, %v1828_v22  ;;  %v2743_v23 = vmov 0.0  }
 0x108   :  { %v2203_v17 = vsel %vm1038_vm15, 1.0, %v2743_v23  ;;  %vm600_vm13 = vcmp.eq.s32.totalorder %v2148_v59, %v1828_v22  ;;  %vm716_vm9 = vcmp.le.f32.partialorder %v639_v38, %v1833_v24  ;;  %v2212_v60 = vsel %vm736_vm12, 1.0, %v2743_v23 }
 0x109   :  { %v2122_v20 = vpop.f32.mrb[24].mxu0  ;;  %v2124_v43 = vpop.f32.mrb[24].mxu1  ;;  %2745 = vst [vmem:[#allocation15_spill] sm:$0xff] %v2203_v17  ;;  %vm1039_vm8 = vcmp.le.f32.partialorder %v659_v18, %v1835_v25  ;;  %v1366_v15 = vsel %vm716_vm9, 1.0, %v2743_v23  ;;  %v640_v17 = vsel %vm576_vm6, %v2008_v7, inf  ;;  %vm737_vm15 = vcmp.le.f32.partialorder %v660_v53, %v1840_v27 }
 0x10a   :  { %2737 = vst [vmem:[#allocation8_spill] sm:$0xff] %v2124_v43  ;;  %v2137_v9 = vpop.f32.mrb[25].mxu0  ;;  %v2139_v11 = vpop.f32.mrb[25].mxu1  ;;  %v1364_v43 = vsel %vm714_vm7, 1.0, %v2732_v2  ;;  %vm1019_vm7 = vcmp.le.f32.partialorder %v639_v38, %v1835_v25  ;;  %v661_v38 = vsel %vm597_vm14, %v1926_v39, inf  ;;  %vm1040_vm14 = vcmp.le.f32.partialorder %v660_v53, %v1842_v28 }
 0x10b   :  { %2739 = vst [vmem:[#allocation10_spill] sm:$0xff] %v2139_v11  ;;  %v897_v30 = vadd.f32 %v1364_v43, %v896_v42  ;;  %v1200_v11 = vadd.f32 %v1428_v55, %v1199_v49  ;;  %v1429_v49 = vsel %vm1018_vm2, 1.0, %v2732_v2  ;;  %v934_v55 = vadd.f32 %v1365_v51, %v933_v14  ;;  %v2193_v2 = vpop.permute.xlu0 %520 }
 0x10c   :  { %v1430_v14 = vsel %vm1019_vm7, 1.0, %v2743_v23  ;;  %vm601_vm11 = vcmp.eq.s32.totalorder %v2193_v2, %v1826_v19  ;;  %vm717_vm0 = vcmp.le.f32.partialorder %v640_v17, %v1840_v27  ;;  %vm1020_vm2 = vcmp.le.f32.partialorder %v640_v17, %v1842_v28 }
 0x10d   :  { %v2165_v6 = vpop.f32.mrb[26].mxu0  ;;  %v2167_v42 = vpop.f32.mrb[26].mxu1  ;;  %v898_v51 = vadd.f32 %v1366_v15, %v897_v30  ;;  %v662_v26 = vsel %vm598_vm3, %v1931_v45, inf  ;;  %v1367_v39 = vsel %vm717_vm0, 1.0, %v2743_v23  ;;  %v1431_v7 = vsel %vm1020_vm2, 1.0, %v2743_v23 }
 0x10e   :  { %2740 = vst [vmem:[#allocation11_spill] sm:$0xff] %v2167_v42  ;;  %v2179_v43 = vpop.f32.mrb[27].mxu0  ;;  %v2181_v31 = vpop.f32.mrb[27].mxu1  ;;  %v1237_v42 = vadd.f32 %v1429_v49, %v1236_v57  ;;  %v1201_v49 = vadd.f32 %v1430_v14, %v1200_v11  ;;  %v2244_v11 = vsel %vm1039_vm8, 1.0, %v2743_v23  ;;  %vm738_vm6 = vcmp.le.f32.partialorder %v661_v38, %v1833_v24 }
 0x10f   :  { %2742 = vst [vmem:[#allocation13_spill] sm:$0xff] %v2181_v31  ;;  %v2198_v31 = vsel %vm735_vm5, 1.0, %v2743_v23  ;;  %vm579_vm5 = vcmp.eq.s32.totalorder %v1870_v46, %v1826_v19  ;;  %v935_v30 = vadd.f32 %v1367_v39, %v934_v55  ;;  %v641_v18 = vsel %vm577_vm4, %v2030_v29, inf }
 0x110   :  { %2744 = vst [vmem:[#allocation14_spill] sm:$0xff] %v2198_v31  ;;  %v1238_v53 = vadd.f32 %v1431_v7, %v1237_v42  ;;  %vm580_vm12 = vcmp.eq.s32.totalorder %v1870_v46, %v1828_v22  ;;  %v2264_v45 = vsel %vm737_vm15, 1.0, %v2743_v23  ;;  %v2267_v15 = vsel %vm1040_vm14, 1.0, %v2743_v23 }
 0x111   :  { %v2217_v57 = vpop.f32.mrb[28].mxu0  ;;  %v2219_v41 = vpop.f32.mrb[28].mxu1  ;;  %vm602_vm3 = vcmp.eq.s32.totalorder %v2193_v2, %v1828_v22  ;;  %vm718_vm9 = vcmp.le.f32.partialorder %v641_v18, %v1833_v24  ;;  %vm1021_vm4 = vcmp.le.f32.partialorder %v641_v18, %v1835_v25  ;;  %vm1041_vm7 = vcmp.le.f32.partialorder %v661_v38, %v1835_v25 }
 0x112   :  { %2746 = vst [vmem:[#allocation16_spill] sm:$0xff] %v2219_v41  ;;  %v2233_v31 = vpop.f32.mrb[29].mxu0  ;;  %v2235_v41 = vpop.f32.mrb[29].mxu1  ;;  %vm739_vm8 = vcmp.le.f32.partialorder %v662_v26, %v1840_v27  ;;  %v1368_v55 = vsel %vm718_vm9, 1.0, %v2743_v23  ;;  %v1432_v14 = vsel %vm1021_vm4, 1.0, %v2743_v23  ;;  %v2284_v39 = vsel %vm738_vm6, 1.0, %v2743_v23 }
 0x113   :  { %2747 = vst [vmem:[#allocation17_spill] sm:$0xff] %v2235_v41  ;;  %v899_v7 = vadd.f32 %v1368_v55, %v898_v51  ;;  %v1202_v41 = vadd.f32 %v1432_v14, %v1201_v49  ;;  %v642_v18 = vsel %vm578_vm1, %v2038_v36, inf  ;;  %vm581_vm15 = vcmp.eq.s32.totalorder %v1894_v61, %v1826_v19 }
 0x114   :  { %vm1042_vm14 = vcmp.le.f32.partialorder %v662_v26, %v1842_v28  ;;  %v663_v38 = vsel %vm599_vm10, %v1948_v56, inf  ;;  %vm719_vm0 = vcmp.le.f32.partialorder %v642_v18, %v1840_v27  ;;  %vm1022_vm2 = vcmp.le.f32.partialorder %v642_v18, %v1842_v28 }
 0x115   :  { %v2259_v17 = vpop.f32.mrb[30].mxu0  ;;  %v2261_v37 = vpop.f32.mrb[30].mxu1  ;;  %v2302_v51 = vsel %vm1041_vm7, 1.0, %v2743_v23  ;;  %v2305_v35 = vsel %vm739_vm8, 1.0, %v2743_v23  ;;  %v1369_v36 = vsel %vm719_vm0, 1.0, %v2743_v23  ;;  %v1433_v49 = vsel %vm1022_vm2, 1.0, %v2743_v23 }
 0x116   :  { %v2273_v29 = vpop.f32.mrb[31].mxu0  ;;  %v2275_v42 = vpop.f32.mrb[31].mxu1  ;;  %v664_v56 = vsel %vm600_vm13, %v1950_v62, inf  ;;  %v936_v26 = vadd.f32 %v1369_v36, %v935_v30  ;;  %v1239_v55 = vadd.f32 %v1433_v49, %v1238_v53  ;;  %v643_v14 = vsel %vm579_vm5, %v2058_v50, inf }
 0x117   :  { %2748 = vst [vmem:[#allocation18_spill] sm:$0xff] %v2275_v42  ;;  %v2292_v42 = vpop.permute.xlu1 %523  ;;  %vm582_vm6 = vcmp.eq.s32.totalorder %v1894_v61, %v1828_v22  ;;  %v2324_v18 = vsel %vm1042_vm14, 1.0, %v2743_v23  ;;  %vm740_vm9 = vcmp.le.f32.partialorder %v663_v38, %v1833_v24  ;;  %vm720_vm13 = vcmp.le.f32.partialorder %v643_v14, %v1833_v24 }
 0x118   :  { %vm603_vm1 = vcmp.eq.s32.totalorder %v2292_v42, %v1826_v19  ;;  %vm604_vm10 = vcmp.eq.s32.totalorder %v2292_v42, %v1828_v22  ;;  %vm1023_vm4 = vcmp.le.f32.partialorder %v643_v14, %v1835_v25  ;;  %vm1043_vm7 = vcmp.le.f32.partialorder %v663_v38, %v1835_v25 }
 0x119   :  { %v665_v62 = vsel %vm601_vm11, %v1963_v5, inf  ;;  %v1370_v50 = vsel %vm720_vm13, 1.0, %v2743_v23  ;;  %v1434_v59 = vsel %vm1023_vm4, 1.0, %v2743_v23  ;;  %vm741_vm5 = vcmp.le.f32.partialorder %v664_v56, %v1840_v27  ;;  %v2349_v5 = vpop.permute.xlu0 %526 }
 0x11a   :  { %v900_v30 = vadd.f32 %v1370_v50, %v899_v7  ;;  %v1203_v53 = vadd.f32 %v1434_v59, %v1202_v41  ;;  %v644_v36 = vsel %vm580_vm12, %v2069_v58, inf  ;;  %vm583_vm8 = vcmp.eq.s32.totalorder %v1918_v21, %v1826_v19 }
 0x11b   :  { %v2344_v38 = vsel %vm740_vm9, 1.0, %v2743_v23  ;;  %vm1044_vm11 = vcmp.le.f32.partialorder %v664_v56, %v1842_v28  ;;  %vm721_vm14 = vcmp.le.f32.partialorder %v644_v36, %v1840_v27  ;;  %vm1024_vm0 = vcmp.le.f32.partialorder %v644_v36, %v1842_v28 }
 0x11c   :  { %v2352_v41 = vsel %vm1043_vm7, 1.0, %v2743_v23  ;;  %vm742_vm2 = vcmp.le.f32.partialorder %v665_v62, %v1833_v24  ;;  %v1371_v46 = vsel %vm721_vm14, 1.0, %v2743_v23  ;;  %v1435_v58 = vsel %vm1024_vm0, 1.0, %v2743_v23 }
 0x11d   :  { %v666_v7 = vsel %vm602_vm3, %v1965_v16, inf  ;;  %vm605_vm12 = vcmp.eq.s32.totalorder %v2349_v5, %v1826_v19  ;;  %v937_v49 = vadd.f32 %v1371_v46, %v936_v26  ;;  %v1240_v14 = vadd.f32 %v1435_v58, %v1239_v55  ;;  %v2392_v46 = vpop.permute.xlu1 %529 }
 0x11e   :  { %v645_v50 = vsel %vm581_vm15, %v2122_v20, inf  ;;  %vm584_vm9 = vcmp.eq.s32.totalorder %v1918_v21, %v1828_v22  ;;  %v2372_v59 = vsel %vm741_vm5, 1.0, %v2743_v23  ;;  %v2375_v2 = vsel %vm1044_vm11, 1.0, %v2743_v23 }
 0x11f   :  { %vm722_vm3 = vcmp.le.f32.partialorder %v645_v50, %v1833_v24  ;;  %vm1025_vm13 = vcmp.le.f32.partialorder %v645_v50, %v1835_v25  ;;  %v2380_v16 = vsel %vm742_vm2, 1.0, %v2743_v23  ;;  %vm1045_vm15 = vcmp.le.f32.partialorder %v665_v62, %v1835_v25 }
 0x120   :  { %v1372_v20 = vsel %vm722_vm3, 1.0, %v2743_v23  ;;  %v1436_v26 = vsel %vm1025_vm13, 1.0, %v2743_v23  ;;  %vm743_vm4 = vcmp.le.f32.partialorder %v666_v7, %v1840_v27  ;;  %v646_v36 = vsel %vm582_vm6, %v2137_v9, inf }
 0x121   :  { %v901_v56 = vadd.f32 %v1372_v20, %v900_v30  ;;  %v1204_v55 = vadd.f32 %v1436_v26, %v1203_v53  ;;  %vm585_vm7 = vcmp.eq.s32.totalorder %v1940_v48, %v1826_v19  ;;  %vm1046_vm5 = vcmp.le.f32.partialorder %v666_v7, %v1842_v28 }
 0x122   :  { %v667_v62 = vsel %vm603_vm1, %v1973_v34, inf  ;;  %vm606_vm11 = vcmp.eq.s32.totalorder %v2349_v5, %v1828_v22  ;;  %vm723_vm14 = vcmp.le.f32.partialorder %v646_v36, %v1840_v27  ;;  %vm1026_vm0 = vcmp.le.f32.partialorder %v646_v36, %v1842_v28 }
 0x123   :  { %v2404_v9 = vsel %vm1045_vm15, 1.0, %v2743_v23  ;;  %v668_v61 = vsel %vm604_vm10, %v1975_v40, inf  ;;  %vm607_vm6 = vcmp.eq.s32.totalorder %v2392_v46, %v1826_v19  ;;  %v1373_v34 = vsel %vm723_vm14, 1.0, %v2743_v23 }
 0x124   :  { %v1437_v30 = vsel %vm1026_vm0, 1.0, %v2743_v23  ;;  %v2417_v53 = vsel %vm743_vm4, 1.0, %v2743_v23  ;;  %v938_v58 = vadd.f32 %v1373_v34, %v937_v49  ;;  %v647_v42 = vsel %vm583_vm8, %v2165_v6, inf }
 0x125   :  { %v1241_v50 = vadd.f32 %v1437_v30, %v1240_v14  ;;  %vm586_vm1 = vcmp.eq.s32.totalorder %v1940_v48, %v1828_v22  ;;  %v2426_v40 = vsel %vm1046_vm5, 1.0, %v2743_v23  ;;  %vm744_vm10 = vcmp.le.f32.partialorder %v667_v62, %v1833_v24 }
 0x126   :  { %vm724_vm2 = vcmp.le.f32.partialorder %v647_v42, %v1833_v24  ;;  %vm1027_vm3 = vcmp.le.f32.partialorder %v647_v42, %v1835_v25  ;;  %vm1047_vm13 = vcmp.le.f32.partialorder %v667_v62, %v1835_v25  ;;  %vm745_vm15 = vcmp.le.f32.partialorder %v668_v61, %v1840_v27 }
 0x127   :  { %v1374_v7 = vsel %vm724_vm2, 1.0, %v2743_v23  ;;  %v1438_v6 = vsel %vm1027_vm3, 1.0, %v2743_v23  ;;  %v669_v49 = vsel %vm605_vm12, %v1983_v47, inf  ;;  %v648_v26 = vsel %vm584_vm9, %v2179_v43, inf }
 0x128   :  { %v902_v14 = vadd.f32 %v1374_v7, %v901_v56  ;;  %v1205_v20 = vadd.f32 %v1438_v6, %v1204_v55  ;;  %vm587_vm8 = vcmp.eq.s32.totalorder %v1955_v0, %v1826_v19  ;;  %v2446_v36 = vsel %vm744_vm10, 1.0, %v2743_v23  ;;  %v533_v55 = vpop.permute.xlu0 %532 }
 0x129   :  { %vm1048_vm4 = vcmp.le.f32.partialorder %v668_v61, %v1842_v28  ;;  %vm608_vm5 = vcmp.eq.s32.totalorder %v2392_v46, %v1828_v22  ;;  %vm725_vm12 = vcmp.le.f32.partialorder %v648_v26, %v1840_v27  ;;  %vm1028_vm14 = vcmp.le.f32.partialorder %v648_v26, %v1842_v28 }
 0x12a   :  { %v2454_v47 = vsel %vm1047_vm13, 1.0, %v2743_v23  ;;  %v2457_v21 = vsel %vm745_vm15, 1.0, %v2743_v23  ;;  %v1375_v43 = vsel %vm725_vm12, 1.0, %v2743_v23  ;;  %v1439_v56 = vsel %vm1028_vm14, 1.0, %v2743_v23 }
 0x12b   :  { %vm746_vm9 = vcmp.le.f32.partialorder %v669_v49, %v1833_v24  ;;  %v939_v62 = vadd.f32 %v1375_v43, %v938_v58  ;;  %v1242_v34 = vadd.f32 %v1439_v56, %v1241_v50  ;;  %v649_v30 = vsel %vm585_vm7, %v2217_v57, inf }
 0x12c   :  { %vm588_vm0 = vcmp.eq.s32.totalorder %v1955_v0, %v1828_v22  ;;  %vm1049_vm10 = vcmp.le.f32.partialorder %v669_v49, %v1835_v25  ;;  %v670_v42 = vsel %vm606_vm11, %v1989_v52, inf  ;;  %vm609_vm2 = vcmp.eq.s32.totalorder %v533_v55, %v1826_v19  ;;  %v2495_v49 = vpop.permute.xlu1 %535 }
 0x12d   :  { %vm726_vm3 = vcmp.le.f32.partialorder %v649_v30, %v1833_v24  ;;  %vm1029_vm13 = vcmp.le.f32.partialorder %v649_v30, %v1835_v25  ;;  %v2479_v57 = vsel %vm1048_vm4, 1.0, %v2743_v23  ;;  %v671_v58 = vsel %vm607_vm6, %v2003_v63, inf }
 0x12e   :  { %v1376_v50 = vsel %vm726_vm3, 1.0, %v2743_v23  ;;  %v1440_v52 = vsel %vm1029_vm13, 1.0, %v2743_v23  ;;  %v2488_v5 = vsel %vm746_vm9, 1.0, %v2743_v23  ;;  %vm610_vm7 = vcmp.eq.s32.totalorder %v533_v55, %v1828_v22 }
 0x12f   :  { %v903_v7 = vadd.f32 %v1376_v50, %v902_v14  ;;  %v1206_v6 = vadd.f32 %v1440_v52, %v1205_v20  ;;  %v650_v61 = vsel %vm586_vm1, %v2233_v31, inf  ;;  %v2498_v63 = vsel %vm1049_vm10, 1.0, %v2743_v23  ;;  %v539_v50 = vpop.permute.xlu0 %538 }
 0x130   :  { %vm747_vm11 = vcmp.le.f32.partialorder %v670_v42, %v1840_v27  ;;  %vm727_vm6 = vcmp.le.f32.partialorder %v650_v61, %v1840_v27  ;;  %vm1030_vm15 = vcmp.le.f32.partialorder %v650_v61, %v1842_v28  ;;  %vm1050_vm4 = vcmp.le.f32.partialorder %v670_v42, %v1842_v28 }
 0x131   :  { %vm748_vm12 = vcmp.le.f32.partialorder %v671_v58, %v1833_v24  ;;  %vm611_vm14 = vcmp.eq.s32.totalorder %v2495_v49, %v1826_v19  ;;  %v1377_v48 = vsel %vm727_vm6, 1.0, %v2743_v23  ;;  %v1441_v31 = vsel %vm1030_vm15, 1.0, %v2743_v23 }
 0x132   :  { %vm1051_vm1 = vcmp.le.f32.partialorder %v671_v58, %v1835_v25  ;;  %v940_v14 = vadd.f32 %v1377_v48, %v939_v62  ;;  %v1243_v20 = vadd.f32 %v1441_v31, %v1242_v34  ;;  %v651_v26 = vsel %vm587_vm8, %v2259_v17, inf }
 0x133   :  { %v2515_v43 = vsel %vm747_vm11, 1.0, %v2743_v23  ;;  %v672_v56 = vsel %vm608_vm5, %v2010_v13, inf  ;;  %vm728_vm9 = vcmp.le.f32.partialorder %v651_v26, %v1833_v24  ;;  %vm1031_vm10 = vcmp.le.f32.partialorder %v651_v26, %v1835_v25 }
 0x134   :  { %v2524_v62 = vsel %vm1050_vm4, 1.0, %v2743_v23  ;;  %v2527_v34 = vsel %vm748_vm12, 1.0, %v2743_v23  ;;  %v1378_v17 = vsel %vm728_vm9, 1.0, %v2743_v23  ;;  %v1442_v30 = vsel %vm1031_vm10, 1.0, %v2743_v23 }
 0x135   :  { %v2532_v42 = vsel %vm1051_vm1, 1.0, %v2743_v23  ;;  %vm612_vm8 = vcmp.eq.s32.totalorder %v2495_v49, %v1828_v22  ;;  %v904_v13 = vadd.f32 %v1378_v17, %v903_v7  ;;  %v1207_v46 = vadd.f32 %v1442_v30, %v1206_v6 }
 0x136   :  { %v652_v58 = vsel %vm588_vm0, %v2273_v29, inf  ;;  %vm749_vm5 = vcmp.le.f32.partialorder %v672_v56, %v1840_v27  ;;  %v673_v52 = vsel %vm609_vm2, %v2032_v12, inf  ;;  %vm613_vm11 = vcmp.eq.s32.totalorder %v539_v50, %v1826_v19 }
 0x137   :  { %vm729_vm3 = vcmp.le.f32.partialorder %v652_v58, %v1840_v27  ;;  %vm1032_vm13 = vcmp.le.f32.partialorder %v652_v58, %v1842_v28  ;;  %v905_v7 = vadd.f32 %v2085_v3, %v904_v13  ;;  %v1208_v6 = vadd.f32 %v2090_v4, %v1207_v46  ;;  %v2582_v13 = vpop.permute.xlu0 %544 }
 0x138   :  { %v1379_v0 = vsel %vm729_vm3, 1.0, %v2743_v23  ;;  %v1443_v29 = vsel %vm1032_vm13, 1.0, %v2743_v23  ;;  %vm1052_vm0 = vcmp.le.f32.partialorder %v672_v56, %v1842_v28  ;;  %v674_v12 = vsel %vm610_vm7, %v2040_v8, inf }
 0x139   :  { %v941_v61 = vadd.f32 %v1379_v0, %v940_v14  ;;  %v1244_v48 = vadd.f32 %v1443_v29, %v1243_v20  ;;  %v2556_v31 = vsel %vm749_vm5, 1.0, %v2743_v23  ;;  %vm750_vm2 = vcmp.le.f32.partialorder %v673_v52, %v1833_v24  ;;  %v542_v20 = vpop.permute.xlu1 %541  ;;  %v2753_v0 = vld [vmem:[#allocation14_spill] sm:$0xff] }
 0x13a   :  { %vm614_vm6 = vcmp.eq.s32.totalorder %v539_v50, %v1828_v22  ;;  %v906_v3 = vadd.f32 %v2105_v44, %v905_v7  ;;  %v1209_v4 = vadd.f32 %v2110_v1, %v1208_v6  ;;  %vm1053_vm15 = vcmp.le.f32.partialorder %v673_v52, %v1835_v25  ;;  %v2749_v1 = vld [vmem:[#allocation12_spill] sm:$0xff]  ;;  %v2752_v7 = vld [vmem:[#allocation6_spill] sm:$0xff] }
 0x13b   :  { %v675_v8 = vsel %vm611_vm14, %v2060_v10, inf  ;;  %v942_v55 = vadd.f32 %v2095_v33, %v941_v61  ;;  %v1245_v14 = vadd.f32 %v2100_v32, %v1244_v48  ;;  %v2570_v26 = vsel %vm1052_vm0, 1.0, %v2743_v23  ;;  %v2750_v10 = vld [vmem:[#allocation7_spill] sm:$0xff]  ;;  %v2751_v32 = vld [vmem:[#allocation9_spill] sm:$0xff] }
 0x13c   :  { %vm751_vm7 = vcmp.le.f32.partialorder %v674_v12, %v1840_v27  ;;  %v907_v44 = vadd.f32 %v2153_v54, %v906_v3  ;;  %v1210_v56 = vadd.f32 %v2749_v1, %v1209_v4  ;;  %v2576_v17 = vsel %vm750_vm2, 1.0, %v2743_v23  ;;  %v2755_v3 = vld [vmem:[#allocation8_spill] sm:$0xff]  ;;  %v2756_v1 = vld [vmem:[#allocation10_spill] sm:$0xff] }
 0x13d   :  { %vm1054_vm4 = vcmp.le.f32.partialorder %v674_v12, %v1842_v28  ;;  %vm615_vm12 = vcmp.eq.s32.totalorder %v542_v20, %v1826_v19  ;;  %v943_v33 = vadd.f32 %v2750_v10, %v942_v55  ;;  %v1246_v30 = vadd.f32 %v2751_v32, %v1245_v14  ;;  %v2754_v12 = vld [vmem:[#allocation15_spill] sm:$0xff] }
 0x13e   :  { %v2585_v46 = vsel %vm1053_vm15, 1.0, %v2743_v23  ;;  %vm752_vm14 = vcmp.le.f32.partialorder %v675_v8, %v1833_v24  ;;  %v908_v54 = vadd.f32 %v2212_v60, %v907_v44  ;;  %v1211_v58 = vadd.f32 %v2244_v11, %v1210_v56  ;;  %v2614_v44 = vpop.permute.xlu1 %547 }
 0x13f   :  { %v2591_v52 = vsel %vm751_vm7, 1.0, %v2743_v23  ;;  %v676_v6 = vsel %vm612_vm8, %v2752_v7, inf  ;;  %vm616_vm1 = vcmp.eq.s32.totalorder %v542_v20, %v1828_v22  ;;  %v944_v29 = vadd.f32 %v2753_v0, %v943_v33  ;;  %v2759_v0 = vld [vmem:[#allocation16_spill] sm:$0xff] }
 0x140   :  { %v1247_v61 = vadd.f32 %v2754_v12, %v1246_v30  ;;  %v2601_v48 = vsel %vm1054_vm4, 1.0, %v2743_v23  ;;  %vm1055_vm9 = vcmp.le.f32.partialorder %v675_v8, %v1835_v25  ;;  %v909_v60 = vadd.f32 %v2284_v39, %v908_v54 }
 0x141   :  { %v1212_v11 = vadd.f32 %v2302_v51, %v1211_v58  ;;  %vm617_vm10 = vcmp.eq.s32.totalorder %v2582_v13, %v1826_v19  ;;  %v1402_v49 = vsel %vm752_vm14, 1.0, %v2743_v23  ;;  %v677_v4 = vsel %vm613_vm11, %v2755_v3, inf  ;;  %v2758_v58 = vld [vmem:[#allocation13_spill] sm:$0xff] }
 0x142   :  { %v945_v55 = vadd.f32 %v2264_v45, %v944_v29  ;;  %v1248_v14 = vadd.f32 %v2267_v15, %v1247_v61  ;;  %vm753_vm8 = vcmp.le.f32.partialorder %v676_v6, %v1840_v27  ;;  %vm1056_vm5 = vcmp.le.f32.partialorder %v676_v6, %v1842_v28 }
 0x143   :  { %v910_v39 = vadd.f32 %v2344_v38, %v909_v60  ;;  %v1213_v51 = vadd.f32 %v2352_v41, %v1212_v11  ;;  %v1466_v8 = vsel %vm1055_vm9, 1.0, %v2743_v23  ;;  %v678_v56 = vsel %vm614_vm6, %v2756_v1, inf }
 0x144   :  { %v946_v45 = vadd.f32 %v2305_v35, %v945_v55  ;;  %v1249_v15 = vadd.f32 %v2324_v18, %v1248_v14  ;;  %vm754_vm3 = vcmp.le.f32.partialorder %v677_v4, %v1833_v24  ;;  %vm1057_vm13 = vcmp.le.f32.partialorder %v677_v4, %v1835_v25  ;;  %v2757_v18 = vld [vmem:[#allocation11_spill] sm:$0xff] }
 0x145   :  { %v911_v10 = vadd.f32 %v2380_v16, %v910_v39  ;;  %v1214_v38 = vadd.f32 %v2404_v9, %v1213_v51  ;;  %vm619_vm11 = vcmp.eq.s32.totalorder %v2614_v44, %v1826_v19  ;;  %v1403_v41 = vsel %vm753_vm8, 1.0, %v2743_v23 }
 0x146   :  { %v1467_v50 = vsel %vm1056_vm5, 1.0, %v2743_v23  ;;  %v947_v33 = vadd.f32 %v2372_v59, %v946_v45  ;;  %v1250_v35 = vadd.f32 %v2375_v2, %v1249_v15  ;;  %vm755_vm0 = vcmp.le.f32.partialorder %v678_v56, %v1840_v27 }
 0x147   :  { %v679_v32 = vsel %vm615_vm12, %v2757_v18, inf  ;;  %v912_v16 = vadd.f32 %v2446_v36, %v911_v10  ;;  %v1215_v9 = vadd.f32 %v2454_v47, %v1214_v38  ;;  %vm618_vm2 = vcmp.eq.s32.totalorder %v2582_v13, %v1828_v22 }
 0x148   :  { %v1404_v30 = vsel %vm754_vm3, 1.0, %v2743_v23  ;;  %v1468_v54 = vsel %vm1057_vm13, 1.0, %v2743_v23  ;;  %v948_v59 = vadd.f32 %v2417_v53, %v947_v33  ;;  %v1251_v2 = vadd.f32 %v2426_v40, %v1250_v35 }
 0x149   :  { %vm1058_vm6 = vcmp.le.f32.partialorder %v678_v56, %v1842_v28  ;;  %v680_v7 = vsel %vm616_vm1, %v2758_v58, inf  ;;  %v913_v36 = vadd.f32 %v2488_v5, %v912_v16  ;;  %v1216_v47 = vadd.f32 %v2498_v63, %v1215_v9 }
 0x14a   :  { %vm620_vm15 = vcmp.eq.s32.totalorder %v2614_v44, %v1828_v22  ;;  %v1405_v6 = vsel %vm755_vm0, 1.0, %v2743_v23  ;;  %vm756_vm7 = vcmp.le.f32.partialorder %v679_v32, %v1833_v24  ;;  %v949_v53 = vadd.f32 %v2457_v21, %v948_v59 }
 0x14b   :  { %v1252_v40 = vadd.f32 %v2479_v57, %v1251_v2  ;;  %vm1059_vm4 = vcmp.le.f32.partialorder %v679_v32, %v1835_v25  ;;  %v681_v5 = vsel %vm617_vm10, %v2759_v0, inf  ;;  %v914_v63 = vadd.f32 %v2527_v34, %v913_v36 }
 0x14c   :  { %v1217_v20 = vadd.f32 %v2532_v42, %v1216_v47  ;;  %v1469_v29 = vsel %vm1058_vm6, 1.0, %v2743_v23  ;;  %vm757_vm12 = vcmp.le.f32.partialorder %v680_v7, %v1840_v27  ;;  %v950_v12 = vadd.f32 %v2515_v43, %v949_v53 }
 0x14d   :  { %v1253_v21 = vadd.f32 %v2524_v62, %v1252_v40  ;;  %v1406_v57 = vsel %vm756_vm7, 1.0, %v2743_v23  ;;  %vm1060_vm14 = vcmp.le.f32.partialorder %v680_v7, %v1842_v28  ;;  %v915_v61 = vadd.f32 %v2576_v17, %v914_v63 }
 0x14e   :  { %v1218_v60 = vadd.f32 %v2585_v46, %v1217_v20  ;;  %v1470_v34 = vsel %vm1059_vm4, 1.0, %v2743_v23  ;;  %vm758_vm1 = vcmp.le.f32.partialorder %v681_v5, %v1833_v24  ;;  %v951_v42 = vadd.f32 %v2556_v31, %v950_v12 }
 0x14f   :  { %v1254_v11 = vadd.f32 %v2570_v26, %v1253_v21  ;;  %v1407_v43 = vsel %vm757_vm12, 1.0, %v2743_v23  ;;  %v683_v62 = vsel %vm619_vm11, %v2261_v37, inf  ;;  %v916_v3 = vadd.f32 %v1402_v49, %v915_v61  ;;  %v2760_v26 = vld [vmem:[#allocation17_spill] sm:$0xff] }
 0x150   :  { %v1219_v4 = vadd.f32 %v1466_v8, %v1218_v60  ;;  %v1471_v17 = vsel %vm1060_vm14, 1.0, %v2743_v23  ;;  %vm1061_vm9 = vcmp.le.f32.partialorder %v681_v5, %v1835_v25  ;;  %v952_v46 = vadd.f32 %v2591_v52, %v951_v42 }
 0x151   :  { %v1255_v55 = vadd.f32 %v2601_v48, %v1254_v11  ;;  %v1408_v31 = vsel %vm758_vm1, 1.0, %v2743_v23  ;;  %v682_v14 = vsel %vm618_vm2, %v2760_v26, inf  ;;  %v917_v39 = vadd.f32 %v1404_v30, %v916_v3  ;;  %v2761_v48 = vld [vmem:[#allocation18_spill] sm:$0xff] }
 0x152   :  { %v1220_v19 = vadd.f32 %v1468_v54, %v1219_v4  ;;  %vm760_vm10 = vcmp.le.f32.partialorder %v683_v62, %v1833_v24  ;;  %vm1063_vm8 = vcmp.le.f32.partialorder %v683_v62, %v1835_v25  ;;  %v953_v37 = vadd.f32 %v1403_v41, %v952_v46 }
 0x153   :  { %v1256_v49 = vadd.f32 %v1467_v50, %v1255_v55  ;;  %v1472_v51 = vsel %vm1061_vm9, 1.0, %v2743_v23  ;;  %v918_v52 = vadd.f32 %v1406_v57, %v917_v39  ;;  %v684_v1 = vsel %vm620_vm15, %v2761_v48, inf  ;;  %v964_v55 = vld [vmem:[#allocation2] ss:$2 sm:$0x3] }
 0x154   :  { %v1221_v8 = vadd.f32 %v1470_v34, %v1220_v19  ;;  %vm759_vm5 = vcmp.le.f32.partialorder %v682_v14, %v1840_v27  ;;  %vm1062_vm3 = vcmp.le.f32.partialorder %v682_v14, %v1842_v28  ;;  %v954_v13 = vadd.f32 %v1405_v6, %v953_v37 }
 0x155   :  { %v1257_v56 = vadd.f32 %v1469_v29, %v1256_v49  ;;  %v1410_v24 = vsel %vm760_vm10, 1.0, %v2743_v23  ;;  %v919_v25 = vadd.f32 %v1408_v31, %v918_v52  ;;  %v1474_v45 = vsel %vm1063_vm8, 1.0, %v2743_v23  ;;  %v1268_v31 = vld [vmem:[#allocation2 + $0x1] ss:$2 sm:$0x3] }
 0x156   :  { %v1222_v15 = vadd.f32 %v1472_v51, %v1221_v8  ;;  %vm761_vm13 = vcmp.le.f32.partialorder %v684_v1, %v1840_v27  ;;  %v955_v10 = vadd.f32 %v1407_v43, %v954_v13  ;;  %vm1064_vm11 = vcmp.le.f32.partialorder %v684_v1, %v1842_v28  ;;  %v2762_v43 = vld [vmem:[#allocation5_spill] sm:$0xff] }
 0x157   :  { %v1258_v38 = vadd.f32 %v1471_v17, %v1257_v56  ;;  %v1409_v22 = vsel %vm759_vm5, 1.0, %v2743_v23  ;;  %v1473_v44 = vsel %vm1062_vm3, 1.0, %v2743_v23  ;;  %v920_v41 = vadd.f32 %v1410_v24, %v919_v25 }
 0x158   :  { %v1223_v50 = vadd.f32 %v1474_v45, %v1222_v15  ;;  %v956_v33 = vadd.f32 %v1409_v22, %v955_v10  ;;  %v1411_v16 = vsel %vm761_vm13, 1.0, %v2743_v23  ;;  %v1475_v9 = vsel %vm1064_vm11, 1.0, %v2743_v23 }
 0x159   :  { %v1259_v35 = vadd.f32 %v1473_v44, %v1258_v38  ;;  %v921_v18 = vrot.slane %v920_v41, 4  ;;  %v1511_v6 = vmov 1966171168   ;;  %v2763_v39 = vlaneseq }
 0x15a   :  { %v1224_v32 = vrot.slane %v1223_v50, 4  ;;  %v957_v30 = vadd.f32 %v1411_v16, %v956_v33  ;;  %v969_v53 = vunpack.c.l.s4 %v1511_v6 }
 0x15b   :  { %v1260_v27 = vadd.f32 %v1475_v9, %v1259_v35  ;;  %v922_v54 = vadd.f32 %v921_v18, %v920_v41  ;;  %vm986_vm0 = vcmp.lt.s32.totalorder %v2763_v39, 256 }
 0x15c   :  { %v1225_v59 = vadd.f32 %v1224_v32, %v1223_v50  ;;  %v958_v28 = vrot.slane %v957_v30, 4  ;;  %v970_v21 = vunpack.c.0.s8 %v969_v53 }
 0x15d   :  { %v1261_v2 = vrot.slane %v1260_v27, 4  ;;  %v923_v58 = vrot.slane %v922_v54, 2 }
 0x15e   :  { %v1226_v7 = vrot.slane %v1225_v59, 2  ;;  %v959_v36 = vadd.f32 %v958_v28, %v957_v30  ;;  %v973_v62 = vsub.s32 %v970_v21, %v2762_v43 }
 0x15f   :  { %v1262_v47 = vadd.f32 %v1261_v2, %v1260_v27  ;;  %v924_v40 = vadd.f32 %v923_v58, %v922_v54 }
 0x160   :  { %v1227_v0 = vadd.f32 %v1226_v7, %v1225_v59  ;;  %v960_v5 = vrot.slane %v959_v36, 2 }
 0x161   :  { %v1263_v63 = vrot.slane %v1262_v47, 2  ;;  %v925_v20 = vrot.slane %v924_v40, 1 }
 0x162   :  { %v1228_v29 = vrot.slane %v1227_v0, 1  ;;  %v961_v12 = vadd.f32 %v960_v5, %v959_v36 }
 0x163   :  { %v1264_v23 = vadd.f32 %v1263_v63, %v1262_v47  ;;  %v926_v57 = vadd.f32 %v925_v20, %v924_v40 }
 0x164   :  { %v1229_v61 = vadd.f32 %v1228_v29, %v1227_v0  ;;  %v962_v60 = vrot.slane %v961_v12, 1 }
 0x165   :  { %v1265_v34 = vrot.slane %v1264_v23, 1 }
 0x166   :  { %v963_v42 = vadd.f32 %v962_v60, %v961_v12 }
 0x167   :  { %v1266_v11 = vadd.f32 %v1265_v34, %v1264_v23 }
 0x168   :  { %v967_v3 = vcombine.low %v926_v57, %v963_v42 }
 0x169   :  { %v1271_v4 = vcombine.low %v1229_v61, %v1266_v11 }
 0x16a   :  { %v974_v17 = vrot.slane %v967_v3, %v973_v62 }
 0x16b   :  { %v1278_v46 = vrot.slane %v1271_v4, %v973_v62 }
 0x16c   :  { %v981_v26 = vrot.slane %v974_v17, %v973_v62 }
 0x16d   :  { %v1285_v14 = vrot.slane %v1278_v46, %v973_v62 }
 0x16e   :  { %v983_v19 = vadd.f32 %v981_v26, %v964_v55 }
 0x16f   :  { %v1287_v37 = vadd.f32 %v1285_v14, %v1268_v31 }
 0x170   :  { %988 = vst.msk [vmem:[#allocation2] ss:$2 sm:$0x3] %vm986_vm0, %v983_v19 }
 0x171   :  { %1288 = vst.msk [vmem:[#allocation2 + $0x1] ss:$2 sm:$0x3] %vm986_vm0, %v1287_v37 }
 0x177   :  { %v1292_v49 = vld [vmem:[#allocation2] ss:$2 sm:$0x3] }
 0x178   :  { %v1296_v51 = vld [vmem:[#allocation2 + $0x1] ss:$2 sm:$0x3]  ;;  %v1293_v52 = vmin.f32 %v1292_v49, 8.0 }
 0x179   :  { %v1297_v8 = vmin.f32 %v1296_v51, 32.0 }
 0x17a   :  { %v1294_v48 = vmul.f32 0.125, %v1293_v52 }
 0x17b   :  { %v1298_v1 = vmul.f32 0.03125, %v1297_v8 }
 0x17c   :  { %1295 = vst.msk [vmem:[#allocation2] ss:$2 sm:$0x3] %vm986_vm0, %v1294_v48 }
 0x17d   :  { %1299 = vst.msk [vmem:[#allocation2 + $0x1] ss:$2 sm:$0x3] %vm986_vm0, %v1298_v1 }
 0x17e   :  { %1496 = shalt.err (!%p1493_p4)
}
 0x17f   :  { %s1497_s23 = scalar_lea.hbm %s2729_s5, 64 }
 0x180   :  { %p1498_p5 = scmp.ne.s32.totalorder %s2729_s5, %s1497_s23  ;;  %p1501_p6 = scmp.lt.u32.totalorder %s1497_s23, %s2729_s5 }
 0x182   :  { %p1503_p7 = pnand %p1501_p6, %p1498_p5 }
 0x184   :  { %1506 = shalt.err (!%p1503_p7)
}
 0x185   :  { %1309 = dma.vmem_to_hbm [thread:$0]  %s1307_s4, 64, %s2729_s5, [#allocation3]  }
 0x186   :  { %1507 = dma.done.wait [#allocation3], 64  }
 0x187   :  { %1508 = vsyncadd [#allocation3], 4294967232 }
 0x188   :  { %1313 = vsyncpa [#allocation3], 1 }

</bundles_post_ra>
